<compile_context>
chip_gen: v6e
topology: v6e:2x2x1
jax: 0.10.0
libtpu: 0.0.40
codegen_flags: <defaults>
</compile_context>

<pallas_src>
import functools

import jax
import jax.numpy as jnp
import numpy as np
from jax.experimental import pallas as pl
from jax.experimental.pallas import tpu as pltpu


# ----------------------------------------------------------------------------
# Fused whole-network Pallas kernel (one image per grid step).
# ----------------------------------------------------------------------------
def _calibrate_kernel(x_ref, mask_ref, in_w_ref, in_b_ref, b1_w_ref, b1_b_ref,
                      b2_w_ref, b2_b_ref, out_w_ref, out_b_ref, o_ref,
                      *, H, W, layers):
    HW = H * W
    x = x_ref[0]                      # (C, HW) f32, spatial on lanes
    masks = mask_ref[...]             # (9, HW) f32 boundary masks (SAME pad)

    # Lane offsets for the 9 taps, dy-major — must match weight packing order.
    offsets = [dy * W + dx for dy in (-1, 0, 1) for dx in (-1, 0, 1)]

    def im2col(a):
        # a: (Cin, HW) -> (9*Cin, HW). Row t*Cin+cin holds channel cin shifted
        # by tap t, with out-of-image source pixels zeroed (zero padding).
        cols = []
        for t, off in enumerate(offsets):
            s = a if off == 0 else pltpu.roll(a, shift=(-off) % HW, axis=1)
            cols.append(s * masks[t:t + 1])
        return jnp.concatenate(cols, axis=0)

    def conv3x3(a, w2d, b, act):
        # w2d: (Cout, 9*Cin) with BN scale pre-folded; b: (Cout, 1) shift.
        y = jnp.dot(w2d, im2col(a), preferred_element_type=jnp.float32) + b
        if act == "relu":
            return jnp.maximum(y, 0.0)
        return jax.nn.sigmoid(y)      # out_conv activation

    fea = conv3x3(x, in_w_ref[...], in_b_ref[...], "relu")
    for _ in range(layers):           # all blocks share weights (PyTorch spec)
        h = conv3x3(fea, b1_w_ref[...], b1_b_ref[...], "relu")
        h = conv3x3(h, b2_w_ref[...], b2_b_ref[...], "relu")
        fea = fea + h                 # residual add, fully in VMEM
    cal = conv3x3(fea, out_w_ref[...], out_b_ref[...], "sigmoid")

    o_ref[0] = (x - cal).astype(o_ref.dtype)   # delta = input - fea


# ----------------------------------------------------------------------------
# Host-side helpers: weight packing, masks, wrapper.
# ----------------------------------------------------------------------------
def _pack_weight(w_hwio, scale):
    """(3,3,Cin,Cout) HWIO conv weight + per-Cout scale -> (Cout, 9*Cin)."""
    cin, cout = w_hwio.shape[2], w_hwio.shape[3]
    w = w_hwio * scale[None, None, None, :]          # fold BN scale into weight
    # column index = (dy_idx*3 + dx_idx)*Cin + cin  (dy-major tap order)
    return jnp.transpose(w, (3, 0, 1, 2)).reshape(cout, 9 * cin)


def _tap_masks(H, W):
    """(9, H*W) f32: 1.0 where the tap's source pixel lies inside the image."""
    hh, ww = np.meshgrid(np.arange(H), np.arange(W), indexing="ij")
    rows = []
    for dy in (-1, 0, 1):
        for dx in (-1, 0, 1):
            valid = ((hh + dy >= 0) & (hh + dy < H) &
                     (ww + dx >= 0) & (ww + dx < W))
            rows.append(valid.reshape(-1))
    return jnp.asarray(np.stack(rows).astype(np.float32))


def calibrate_network_forward(x_nchw, params, layers):
    N, C, H, W = x_nchw.shape
    HW = H * W
    x2d = x_nchw.reshape(N, C, HW)    # free reshape: NCHW is already (C, HW)-major

    tap_mask = _tap_masks(H, W)
    in_w = _pack_weight(params["in_w"], params["in_scale"])
    b1_w = _pack_weight(params["b1_w"], params["b1_scale"])
    b2_w = _pack_weight(params["b2_w"], params["b2_scale"])
    out_w = _pack_weight(params["out_w"], params["out_scale"])
    in_b = params["in_shift"].reshape(-1, 1)
    b1_b = params["b1_shift"].reshape(-1, 1)
    b2_b = params["b2_shift"].reshape(-1, 1)
    out_b = params["out_shift"].reshape(-1, 1)

    kernel = functools.partial(_calibrate_kernel, H=H, W=W, layers=layers)

    def _const(shape):
        return pl.BlockSpec(shape, lambda n: (0,) * len(shape))

    out = pl.pallas_call(
        kernel,
        out_shape=jax.ShapeDtypeStruct((N, C, HW), x_nchw.dtype),
        grid_spec=pltpu.PrefetchScalarGridSpec(
            num_scalar_prefetch=0,
            grid=(N,),
            in_specs=[
                pl.BlockSpec((1, C, HW), lambda n: (n, 0, 0)),
                _const(tap_mask.shape),
                _const(in_w.shape), _const(in_b.shape),
                _const(b1_w.shape), _const(b1_b.shape),
                _const(b2_w.shape), _const(b2_b.shape),
                _const(out_w.shape), _const(out_b.shape),
            ],
            out_specs=pl.BlockSpec((1, C, HW), lambda n: (n, 0, 0)),
        ),
        compiler_params=pltpu.CompilerParams(
            dimension_semantics=("parallel",)),
    )(x2d, tap_mask, in_w, in_b, b1_w, b1_b, b2_w, b2_b, out_w, out_b)

    return out.reshape(N, C, H, W)


# ----------------------------------------------------------------------------
# Parameter construction (deterministic, synthetic) + BN folding.
# ----------------------------------------------------------------------------
def _fold_bn(bias, gamma, beta, mean, var, eps=1e-5):
    s = gamma / jnp.sqrt(var + eps)
    return s, (bias - mean) * s + beta


def make_params(key, channels):
    c, c2 = channels, channels * 2
    ks = jax.random.split(key, 4)

    def conv_w(k, cin, cout):
        return 0.1 * jax.random.normal(k, (3, 3, cin, cout), jnp.float32)

    def bn(cout):
        gamma = jnp.linspace(0.9, 1.1, cout, dtype=jnp.float32)
        beta = jnp.linspace(-0.05, 0.05, cout, dtype=jnp.float32)
        mean = jnp.zeros((cout,), jnp.float32)   # eval-mode running stats
        var = jnp.ones((cout,), jnp.float32)
        return gamma, beta, mean, var

    params = {}
    # in_conv: Conv(C -> 2C) + BN + ReLU
    params["in_w"] = conv_w(ks[0], c, c2)
    b = jnp.linspace(-0.01, 0.01, c2, dtype=jnp.float32)
    params["in_scale"], params["in_shift"] = _fold_bn(b, *bn(c2))
    # shared block (self.convs): two of Conv(2C -> 2C) + BN + ReLU
    params["b1_w"] = conv_w(ks[1], c2, c2)
    b = jnp.linspace(-0.02, 0.02, c2, dtype=jnp.float32)
    params["b1_scale"], params["b1_shift"] = _fold_bn(b, *bn(c2))
    params["b2_w"] = conv_w(ks[2], c2, c2)
    b = jnp.linspace(-0.03, 0.03, c2, dtype=jnp.float32)
    params["b2_scale"], params["b2_shift"] = _fold_bn(b, *bn(c2))
    # out_conv: Conv(2C -> C) + Sigmoid (no BN)
    params["out_w"] = conv_w(ks[3], c2, c)
    params["out_scale"] = jnp.ones((c,), jnp.float32)
    params["out_shift"] = jnp.linspace(-0.01, 0.01, c, dtype=jnp.float32)
    return params


# ----------------------------------------------------------------------------
# Pure-JAX reference (lax conv, NHWC) for correctness checking.
# ----------------------------------------------------------------------------
def _ref_conv(x, w, scale, shift, act):
    y = jax.lax.conv_general_dilated(
        x, w, window_strides=(1, 1), padding="SAME",
        dimension_numbers=("NHWC", "HWIO", "NHWC"))
    y = y * scale[None, None, None, :] + shift[None, None, None, :]
    if act == "relu":
        y = jnp.maximum(y, 0.0)
    elif act == "sigmoid":
        y = jax.nn.sigmoid(y)
    return y


def _ref_forward(x_nchw, params, layers):
    x = jnp.transpose(x_nchw, (0, 2, 3, 1))
    fea = _ref_conv(x, params["in_w"], params["in_scale"],
                    params["in_shift"], "relu")
    for _ in range(layers):
        h = _ref_conv(fea, params["b1_w"], params["b1_scale"],
                      params["b1_shift"], "relu")
        h = _ref_conv(h, params["b2_w"], params["b2_scale"],
                      params["b2_shift"], "relu")
        fea = fea + h
    fea = _ref_conv(fea, params["out_w"], params["out_scale"],
                    params["out_shift"], "sigmoid")
    return jnp.transpose(x - fea, (0, 3, 1, 2))


if __name__ == "__main__":
    # Small shapes consistent with the module: batch=2, channels=4, 16x16.
    N, C, H, W = 2, 4, 16, 16
    LAYERS = 2

    key = jax.random.PRNGKey(0)
    kx, kp = jax.random.split(key)
    x_nchw = jax.random.normal(kx, (N, C, H, W), jnp.float32)
    params = make_params(kp, C)

    fwd = jax.jit(functools.partial(calibrate_network_forward, layers=LAYERS))
    delta = jax.block_until_ready(fwd(x_nchw, params))

    ref = jax.block_until_ready(_ref_forward(x_nchw, params, LAYERS))
    assert delta.shape == (N, C, H, W)
    np.testing.assert_allclose(np.asarray(delta), np.asarray(ref),
                               rtol=1e-3, atol=1e-3)

    print("KERNEL_OK")
</pallas_src>

<mosaic_0001>
module attributes {stable_mosaic.version = 11 : i64} {
  func.func @_calibrate_kernel(%arg0: i32, %arg1: memref<1x4x256xf32, #tpu.memory_space<vmem>>, %arg2: memref<9x256xf32, #tpu.memory_space<vmem>>, %arg3: memref<8x36xf32, #tpu.memory_space<vmem>>, %arg4: memref<8x1xf32, #tpu.memory_space<vmem>>, %arg5: memref<8x72xf32, #tpu.memory_space<vmem>>, %arg6: memref<8x1xf32, #tpu.memory_space<vmem>>, %arg7: memref<8x72xf32, #tpu.memory_space<vmem>>, %arg8: memref<8x1xf32, #tpu.memory_space<vmem>>, %arg9: memref<4x72xf32, #tpu.memory_space<vmem>>, %arg10: memref<4x1xf32, #tpu.memory_space<vmem>>, %arg11: memref<1x4x256xf32, #tpu.memory_space<vmem>>) attributes {dimension_semantics = [#tpu.dimension_semantics<parallel>], iteration_bounds = array<i64: 2>, scalar_prefetch = 0 : i64, scratch_operands = 0 : i64, tpu.core_type = #tpu.core_type<tc>, window_params = [{transform_indices = @transform_0, window_bounds = array<i64: 1, 4, 256>}, {pipeline_mode = #tpu.pipeline_mode<synchronous>, transform_indices = @transform_1, window_bounds = array<i64: 9, 256>}, {pipeline_mode = #tpu.pipeline_mode<synchronous>, transform_indices = @transform_2, window_bounds = array<i64: 8, 36>}, {pipeline_mode = #tpu.pipeline_mode<synchronous>, transform_indices = @transform_3, window_bounds = array<i64: 8, 1>}, {pipeline_mode = #tpu.pipeline_mode<synchronous>, transform_indices = @transform_4, window_bounds = array<i64: 8, 72>}, {pipeline_mode = #tpu.pipeline_mode<synchronous>, transform_indices = @transform_5, window_bounds = array<i64: 8, 1>}, {pipeline_mode = #tpu.pipeline_mode<synchronous>, transform_indices = @transform_6, window_bounds = array<i64: 8, 72>}, {pipeline_mode = #tpu.pipeline_mode<synchronous>, transform_indices = @transform_7, window_bounds = array<i64: 8, 1>}, {pipeline_mode = #tpu.pipeline_mode<synchronous>, transform_indices = @transform_8, window_bounds = array<i64: 4, 72>}, {pipeline_mode = #tpu.pipeline_mode<synchronous>, transform_indices = @transform_9, window_bounds = array<i64: 4, 1>}, {transform_indices = @transform_10, window_bounds = array<i64: 1, 4, 256>}]} {
    %c0 = arith.constant 0 : index
    %c0_0 = arith.constant 0 : index
    %c0_1 = arith.constant 0 : index
    %0 = vector.load %arg1[%c0, %c0_0, %c0_1] : memref<1x4x256xf32, #tpu.memory_space<vmem>>, vector<1x4x256xf32>
    %1 = vector.shape_cast %0 : vector<1x4x256xf32> to vector<4x256xf32>
    %c0_2 = arith.constant 0 : index
    %c0_3 = arith.constant 0 : index
    %2 = vector.load %arg2[%c0_2, %c0_3] : memref<9x256xf32, #tpu.memory_space<vmem>>, vector<9x256xf32>
    %c0_4 = arith.constant 0 : index
    %c0_5 = arith.constant 0 : index
    %3 = vector.load %arg3[%c0_4, %c0_5] : memref<8x36xf32, #tpu.memory_space<vmem>>, vector<8x36xf32>
    %c0_6 = arith.constant 0 : index
    %c0_7 = arith.constant 0 : index
    %4 = vector.load %arg4[%c0_6, %c0_7] : memref<8x1xf32, #tpu.memory_space<vmem>>, vector<8x1xf32>
    %c17_i32 = arith.constant 17 : i32
    %5 = tpu.dynamic_rotate %1 by %c17_i32 dim 1 : vector<4x256xf32>, i32 -> vector<4x256xf32>
    %6 = vector.extract_strided_slice %2 {offsets = [0, 0], sizes = [1, 256], strides = [1, 1]} : vector<9x256xf32> to vector<1x256xf32>
    %7 = vector.broadcast %6 : vector<1x256xf32> to vector<4x256xf32>
    %8 = arith.mulf %5, %7 : vector<4x256xf32>
    %c16_i32 = arith.constant 16 : i32
    %9 = tpu.dynamic_rotate %1 by %c16_i32 dim 1 : vector<4x256xf32>, i32 -> vector<4x256xf32>
    %10 = vector.extract_strided_slice %2 {offsets = [1, 0], sizes = [1, 256], strides = [1, 1]} : vector<9x256xf32> to vector<1x256xf32>
    %11 = vector.broadcast %10 : vector<1x256xf32> to vector<4x256xf32>
    %12 = arith.mulf %9, %11 : vector<4x256xf32>
    %c15_i32 = arith.constant 15 : i32
    %13 = tpu.dynamic_rotate %1 by %c15_i32 dim 1 : vector<4x256xf32>, i32 -> vector<4x256xf32>
    %14 = vector.extract_strided_slice %2 {offsets = [2, 0], sizes = [1, 256], strides = [1, 1]} : vector<9x256xf32> to vector<1x256xf32>
    %15 = vector.broadcast %14 : vector<1x256xf32> to vector<4x256xf32>
    %16 = arith.mulf %13, %15 : vector<4x256xf32>
    %c1_i32 = arith.constant 1 : i32
    %17 = tpu.dynamic_rotate %1 by %c1_i32 dim 1 : vector<4x256xf32>, i32 -> vector<4x256xf32>
    %18 = vector.extract_strided_slice %2 {offsets = [3, 0], sizes = [1, 256], strides = [1, 1]} : vector<9x256xf32> to vector<1x256xf32>
    %19 = vector.broadcast %18 : vector<1x256xf32> to vector<4x256xf32>
    %20 = arith.mulf %17, %19 : vector<4x256xf32>
    %21 = vector.extract_strided_slice %2 {offsets = [4, 0], sizes = [1, 256], strides = [1, 1]} : vector<9x256xf32> to vector<1x256xf32>
    %22 = vector.broadcast %21 : vector<1x256xf32> to vector<4x256xf32>
    %23 = arith.mulf %1, %22 : vector<4x256xf32>
    %c255_i32 = arith.constant 255 : i32
    %24 = tpu.dynamic_rotate %1 by %c255_i32 dim 1 : vector<4x256xf32>, i32 -> vector<4x256xf32>
    %25 = vector.extract_strided_slice %2 {offsets = [5, 0], sizes = [1, 256], strides = [1, 1]} : vector<9x256xf32> to vector<1x256xf32>
    %26 = vector.broadcast %25 : vector<1x256xf32> to vector<4x256xf32>
    %27 = arith.mulf %24, %26 : vector<4x256xf32>
    %c241_i32 = arith.constant 241 : i32
    %28 = tpu.dynamic_rotate %1 by %c241_i32 dim 1 : vector<4x256xf32>, i32 -> vector<4x256xf32>
    %29 = vector.extract_strided_slice %2 {offsets = [6, 0], sizes = [1, 256], strides = [1, 1]} : vector<9x256xf32> to vector<1x256xf32>
    %30 = vector.broadcast %29 : vector<1x256xf32> to vector<4x256xf32>
    %31 = arith.mulf %28, %30 : vector<4x256xf32>
    %c240_i32 = arith.constant 240 : i32
    %32 = tpu.dynamic_rotate %1 by %c240_i32 dim 1 : vector<4x256xf32>, i32 -> vector<4x256xf32>
    %33 = vector.extract_strided_slice %2 {offsets = [7, 0], sizes = [1, 256], strides = [1, 1]} : vector<9x256xf32> to vector<1x256xf32>
    %34 = vector.broadcast %33 : vector<1x256xf32> to vector<4x256xf32>
    %35 = arith.mulf %32, %34 : vector<4x256xf32>
    %c239_i32 = arith.constant 239 : i32
    %36 = tpu.dynamic_rotate %1 by %c239_i32 dim 1 : vector<4x256xf32>, i32 -> vector<4x256xf32>
    %37 = vector.extract_strided_slice %2 {offsets = [8, 0], sizes = [1, 256], strides = [1, 1]} : vector<9x256xf32> to vector<1x256xf32>
    %38 = vector.broadcast %37 : vector<1x256xf32> to vector<4x256xf32>
    %39 = arith.mulf %36, %38 : vector<4x256xf32>
    %40 = tpu.concatenate %8, %12, %16, %20, %23, %27, %31, %35, %39 in 0 : vector<4x256xf32>, vector<4x256xf32>, vector<4x256xf32>, vector<4x256xf32>, vector<4x256xf32>, vector<4x256xf32>, vector<4x256xf32>, vector<4x256xf32>, vector<4x256xf32> -> vector<36x256xf32>
    %cst = arith.constant dense<0.000000e+00> : vector<8x256xf32>
    %41 = tpu.matmul %3, %40, %cst {dimension_numbers = #tpu.dot_dimension_numbers<[1], [0], [0], [1], [0, 0, 1, 1], [], []>} : vector<8x36xf32>, vector<36x256xf32>, vector<8x256xf32> -> vector<8x256xf32>
    %42 = vector.broadcast %4 : vector<8x1xf32> to vector<8x256xf32>
    %43 = arith.addf %41, %42 : vector<8x256xf32>
    %cst_8 = arith.constant 0.000000e+00 : f32
    %44 = vector.broadcast %cst_8 : f32 to vector<8x256xf32>
    %45 = arith.maximumf %43, %44 : vector<8x256xf32>
    %c0_9 = arith.constant 0 : index
    %c0_10 = arith.constant 0 : index
    %46 = vector.load %arg5[%c0_9, %c0_10] : memref<8x72xf32, #tpu.memory_space<vmem>>, vector<8x72xf32>
    %c0_11 = arith.constant 0 : index
    %c0_12 = arith.constant 0 : index
    %47 = vector.load %arg6[%c0_11, %c0_12] : memref<8x1xf32, #tpu.memory_space<vmem>>, vector<8x1xf32>
    %c17_i32_13 = arith.constant 17 : i32
    %48 = tpu.dynamic_rotate %45 by %c17_i32_13 dim 1 : vector<8x256xf32>, i32 -> vector<8x256xf32>
    %49 = vector.extract_strided_slice %2 {offsets = [0, 0], sizes = [1, 256], strides = [1, 1]} : vector<9x256xf32> to vector<1x256xf32>
    %50 = vector.broadcast %49 : vector<1x256xf32> to vector<8x256xf32>
    %51 = arith.mulf %48, %50 : vector<8x256xf32>
    %c16_i32_14 = arith.constant 16 : i32
    %52 = tpu.dynamic_rotate %45 by %c16_i32_14 dim 1 : vector<8x256xf32>, i32 -> vector<8x256xf32>
    %53 = vector.extract_strided_slice %2 {offsets = [1, 0], sizes = [1, 256], strides = [1, 1]} : vector<9x256xf32> to vector<1x256xf32>
    %54 = vector.broadcast %53 : vector<1x256xf32> to vector<8x256xf32>
    %55 = arith.mulf %52, %54 : vector<8x256xf32>
    %c15_i32_15 = arith.constant 15 : i32
    %56 = tpu.dynamic_rotate %45 by %c15_i32_15 dim 1 : vector<8x256xf32>, i32 -> vector<8x256xf32>
    %57 = vector.extract_strided_slice %2 {offsets = [2, 0], sizes = [1, 256], strides = [1, 1]} : vector<9x256xf32> to vector<1x256xf32>
    %58 = vector.broadcast %57 : vector<1x256xf32> to vector<8x256xf32>
    %59 = arith.mulf %56, %58 : vector<8x256xf32>
    %c1_i32_16 = arith.constant 1 : i32
    %60 = tpu.dynamic_rotate %45 by %c1_i32_16 dim 1 : vector<8x256xf32>, i32 -> vector<8x256xf32>
    %61 = vector.extract_strided_slice %2 {offsets = [3, 0], sizes = [1, 256], strides = [1, 1]} : vector<9x256xf32> to vector<1x256xf32>
    %62 = vector.broadcast %61 : vector<1x256xf32> to vector<8x256xf32>
    %63 = arith.mulf %60, %62 : vector<8x256xf32>
    %64 = vector.extract_strided_slice %2 {offsets = [4, 0], sizes = [1, 256], strides = [1, 1]} : vector<9x256xf32> to vector<1x256xf32>
    %65 = vector.broadcast %64 : vector<1x256xf32> to vector<8x256xf32>
    %66 = arith.mulf %45, %65 : vector<8x256xf32>
    %c255_i32_17 = arith.constant 255 : i32
    %67 = tpu.dynamic_rotate %45 by %c255_i32_17 dim 1 : vector<8x256xf32>, i32 -> vector<8x256xf32>
    %68 = vector.extract_strided_slice %2 {offsets = [5, 0], sizes = [1, 256], strides = [1, 1]} : vector<9x256xf32> to vector<1x256xf32>
    %69 = vector.broadcast %68 : vector<1x256xf32> to vector<8x256xf32>
    %70 = arith.mulf %67, %69 : vector<8x256xf32>
    %c241_i32_18 = arith.constant 241 : i32
    %71 = tpu.dynamic_rotate %45 by %c241_i32_18 dim 1 : vector<8x256xf32>, i32 -> vector<8x256xf32>
    %72 = vector.extract_strided_slice %2 {offsets = [6, 0], sizes = [1, 256], strides = [1, 1]} : vector<9x256xf32> to vector<1x256xf32>
    %73 = vector.broadcast %72 : vector<1x256xf32> to vector<8x256xf32>
    %74 = arith.mulf %71, %73 : vector<8x256xf32>
    %c240_i32_19 = arith.constant 240 : i32
    %75 = tpu.dynamic_rotate %45 by %c240_i32_19 dim 1 : vector<8x256xf32>, i32 -> vector<8x256xf32>
    %76 = vector.extract_strided_slice %2 {offsets = [7, 0], sizes = [1, 256], strides = [1, 1]} : vector<9x256xf32> to vector<1x256xf32>
    %77 = vector.broadcast %76 : vector<1x256xf32> to vector<8x256xf32>
    %78 = arith.mulf %75, %77 : vector<8x256xf32>
    %c239_i32_20 = arith.constant 239 : i32
    %79 = tpu.dynamic_rotate %45 by %c239_i32_20 dim 1 : vector<8x256xf32>, i32 -> vector<8x256xf32>
    %80 = vector.extract_strided_slice %2 {offsets = [8, 0], sizes = [1, 256], strides = [1, 1]} : vector<9x256xf32> to vector<1x256xf32>
    %81 = vector.broadcast %80 : vector<1x256xf32> to vector<8x256xf32>
    %82 = arith.mulf %79, %81 : vector<8x256xf32>
    %83 = tpu.concatenate %51, %55, %59, %63, %66, %70, %74, %78, %82 in 0 : vector<8x256xf32>, vector<8x256xf32>, vector<8x256xf32>, vector<8x256xf32>, vector<8x256xf32>, vector<8x256xf32>, vector<8x256xf32>, vector<8x256xf32>, vector<8x256xf32> -> vector<72x256xf32>
    %cst_21 = arith.constant dense<0.000000e+00> : vector<8x256xf32>
    %84 = tpu.matmul %46, %83, %cst_21 {dimension_numbers = #tpu.dot_dimension_numbers<[1], [0], [0], [1], [0, 0, 1, 1], [], []>} : vector<8x72xf32>, vector<72x256xf32>, vector<8x256xf32> -> vector<8x256xf32>
    %85 = vector.broadcast %47 : vector<8x1xf32> to vector<8x256xf32>
    %86 = arith.addf %84, %85 : vector<8x256xf32>
    %cst_22 = arith.constant 0.000000e+00 : f32
    %87 = vector.broadcast %cst_22 : f32 to vector<8x256xf32>
    %88 = arith.maximumf %86, %87 : vector<8x256xf32>
    %c0_23 = arith.constant 0 : index
    %c0_24 = arith.constant 0 : index
    %89 = vector.load %arg7[%c0_23, %c0_24] : memref<8x72xf32, #tpu.memory_space<vmem>>, vector<8x72xf32>
    %c0_25 = arith.constant 0 : index
    %c0_26 = arith.constant 0 : index
    %90 = vector.load %arg8[%c0_25, %c0_26] : memref<8x1xf32, #tpu.memory_space<vmem>>, vector<8x1xf32>
    %c17_i32_27 = arith.constant 17 : i32
    %91 = tpu.dynamic_rotate %88 by %c17_i32_27 dim 1 : vector<8x256xf32>, i32 -> vector<8x256xf32>
    %92 = vector.extract_strided_slice %2 {offsets = [0, 0], sizes = [1, 256], strides = [1, 1]} : vector<9x256xf32> to vector<1x256xf32>
    %93 = vector.broadcast %92 : vector<1x256xf32> to vector<8x256xf32>
    %94 = arith.mulf %91, %93 : vector<8x256xf32>
    %c16_i32_28 = arith.constant 16 : i32
    %95 = tpu.dynamic_rotate %88 by %c16_i32_28 dim 1 : vector<8x256xf32>, i32 -> vector<8x256xf32>
    %96 = vector.extract_strided_slice %2 {offsets = [1, 0], sizes = [1, 256], strides = [1, 1]} : vector<9x256xf32> to vector<1x256xf32>
    %97 = vector.broadcast %96 : vector<1x256xf32> to vector<8x256xf32>
    %98 = arith.mulf %95, %97 : vector<8x256xf32>
    %c15_i32_29 = arith.constant 15 : i32
    %99 = tpu.dynamic_rotate %88 by %c15_i32_29 dim 1 : vector<8x256xf32>, i32 -> vector<8x256xf32>
    %100 = vector.extract_strided_slice %2 {offsets = [2, 0], sizes = [1, 256], strides = [1, 1]} : vector<9x256xf32> to vector<1x256xf32>
    %101 = vector.broadcast %100 : vector<1x256xf32> to vector<8x256xf32>
    %102 = arith.mulf %99, %101 : vector<8x256xf32>
    %c1_i32_30 = arith.constant 1 : i32
    %103 = tpu.dynamic_rotate %88 by %c1_i32_30 dim 1 : vector<8x256xf32>, i32 -> vector<8x256xf32>
    %104 = vector.extract_strided_slice %2 {offsets = [3, 0], sizes = [1, 256], strides = [1, 1]} : vector<9x256xf32> to vector<1x256xf32>
    %105 = vector.broadcast %104 : vector<1x256xf32> to vector<8x256xf32>
    %106 = arith.mulf %103, %105 : vector<8x256xf32>
    %107 = vector.extract_strided_slice %2 {offsets = [4, 0], sizes = [1, 256], strides = [1, 1]} : vector<9x256xf32> to vector<1x256xf32>
    %108 = vector.broadcast %107 : vector<1x256xf32> to vector<8x256xf32>
    %109 = arith.mulf %88, %108 : vector<8x256xf32>
    %c255_i32_31 = arith.constant 255 : i32
    %110 = tpu.dynamic_rotate %88 by %c255_i32_31 dim 1 : vector<8x256xf32>, i32 -> vector<8x256xf32>
    %111 = vector.extract_strided_slice %2 {offsets = [5, 0], sizes = [1, 256], strides = [1, 1]} : vector<9x256xf32> to vector<1x256xf32>
    %112 = vector.broadcast %111 : vector<1x256xf32> to vector<8x256xf32>
    %113 = arith.mulf %110, %112 : vector<8x256xf32>
    %c241_i32_32 = arith.constant 241 : i32
    %114 = tpu.dynamic_rotate %88 by %c241_i32_32 dim 1 : vector<8x256xf32>, i32 -> vector<8x256xf32>
    %115 = vector.extract_strided_slice %2 {offsets = [6, 0], sizes = [1, 256], strides = [1, 1]} : vector<9x256xf32> to vector<1x256xf32>
    %116 = vector.broadcast %115 : vector<1x256xf32> to vector<8x256xf32>
    %117 = arith.mulf %114, %116 : vector<8x256xf32>
    %c240_i32_33 = arith.constant 240 : i32
    %118 = tpu.dynamic_rotate %88 by %c240_i32_33 dim 1 : vector<8x256xf32>, i32 -> vector<8x256xf32>
    %119 = vector.extract_strided_slice %2 {offsets = [7, 0], sizes = [1, 256], strides = [1, 1]} : vector<9x256xf32> to vector<1x256xf32>
    %120 = vector.broadcast %119 : vector<1x256xf32> to vector<8x256xf32>
    %121 = arith.mulf %118, %120 : vector<8x256xf32>
    %c239_i32_34 = arith.constant 239 : i32
    %122 = tpu.dynamic_rotate %88 by %c239_i32_34 dim 1 : vector<8x256xf32>, i32 -> vector<8x256xf32>
    %123 = vector.extract_strided_slice %2 {offsets = [8, 0], sizes = [1, 256], strides = [1, 1]} : vector<9x256xf32> to vector<1x256xf32>
    %124 = vector.broadcast %123 : vector<1x256xf32> to vector<8x256xf32>
    %125 = arith.mulf %122, %124 : vector<8x256xf32>
    %126 = tpu.concatenate %94, %98, %102, %106, %109, %113, %117, %121, %125 in 0 : vector<8x256xf32>, vector<8x256xf32>, vector<8x256xf32>, vector<8x256xf32>, vector<8x256xf32>, vector<8x256xf32>, vector<8x256xf32>, vector<8x256xf32>, vector<8x256xf32> -> vector<72x256xf32>
    %cst_35 = arith.constant dense<0.000000e+00> : vector<8x256xf32>
    %127 = tpu.matmul %89, %126, %cst_35 {dimension_numbers = #tpu.dot_dimension_numbers<[1], [0], [0], [1], [0, 0, 1, 1], [], []>} : vector<8x72xf32>, vector<72x256xf32>, vector<8x256xf32> -> vector<8x256xf32>
    %128 = vector.broadcast %90 : vector<8x1xf32> to vector<8x256xf32>
    %129 = arith.addf %127, %128 : vector<8x256xf32>
    %cst_36 = arith.constant 0.000000e+00 : f32
    %130 = vector.broadcast %cst_36 : f32 to vector<8x256xf32>
    %131 = arith.maximumf %129, %130 : vector<8x256xf32>
    %132 = arith.addf %45, %131 : vector<8x256xf32>
    %c0_37 = arith.constant 0 : index
    %c0_38 = arith.constant 0 : index
    %133 = vector.load %arg5[%c0_37, %c0_38] : memref<8x72xf32, #tpu.memory_space<vmem>>, vector<8x72xf32>
    %c0_39 = arith.constant 0 : index
    %c0_40 = arith.constant 0 : index
    %134 = vector.load %arg6[%c0_39, %c0_40] : memref<8x1xf32, #tpu.memory_space<vmem>>, vector<8x1xf32>
    %c17_i32_41 = arith.constant 17 : i32
    %135 = tpu.dynamic_rotate %132 by %c17_i32_41 dim 1 : vector<8x256xf32>, i32 -> vector<8x256xf32>
    %136 = vector.extract_strided_slice %2 {offsets = [0, 0], sizes = [1, 256], strides = [1, 1]} : vector<9x256xf32> to vector<1x256xf32>
    %137 = vector.broadcast %136 : vector<1x256xf32> to vector<8x256xf32>
    %138 = arith.mulf %135, %137 : vector<8x256xf32>
    %c16_i32_42 = arith.constant 16 : i32
    %139 = tpu.dynamic_rotate %132 by %c16_i32_42 dim 1 : vector<8x256xf32>, i32 -> vector<8x256xf32>
    %140 = vector.extract_strided_slice %2 {offsets = [1, 0], sizes = [1, 256], strides = [1, 1]} : vector<9x256xf32> to vector<1x256xf32>
    %141 = vector.broadcast %140 : vector<1x256xf32> to vector<8x256xf32>
    %142 = arith.mulf %139, %141 : vector<8x256xf32>
    %c15_i32_43 = arith.constant 15 : i32
    %143 = tpu.dynamic_rotate %132 by %c15_i32_43 dim 1 : vector<8x256xf32>, i32 -> vector<8x256xf32>
    %144 = vector.extract_strided_slice %2 {offsets = [2, 0], sizes = [1, 256], strides = [1, 1]} : vector<9x256xf32> to vector<1x256xf32>
    %145 = vector.broadcast %144 : vector<1x256xf32> to vector<8x256xf32>
    %146 = arith.mulf %143, %145 : vector<8x256xf32>
    %c1_i32_44 = arith.constant 1 : i32
    %147 = tpu.dynamic_rotate %132 by %c1_i32_44 dim 1 : vector<8x256xf32>, i32 -> vector<8x256xf32>
    %148 = vector.extract_strided_slice %2 {offsets = [3, 0], sizes = [1, 256], strides = [1, 1]} : vector<9x256xf32> to vector<1x256xf32>
    %149 = vector.broadcast %148 : vector<1x256xf32> to vector<8x256xf32>
    %150 = arith.mulf %147, %149 : vector<8x256xf32>
    %151 = vector.extract_strided_slice %2 {offsets = [4, 0], sizes = [1, 256], strides = [1, 1]} : vector<9x256xf32> to vector<1x256xf32>
    %152 = vector.broadcast %151 : vector<1x256xf32> to vector<8x256xf32>
    %153 = arith.mulf %132, %152 : vector<8x256xf32>
    %c255_i32_45 = arith.constant 255 : i32
    %154 = tpu.dynamic_rotate %132 by %c255_i32_45 dim 1 : vector<8x256xf32>, i32 -> vector<8x256xf32>
    %155 = vector.extract_strided_slice %2 {offsets = [5, 0], sizes = [1, 256], strides = [1, 1]} : vector<9x256xf32> to vector<1x256xf32>
    %156 = vector.broadcast %155 : vector<1x256xf32> to vector<8x256xf32>
    %157 = arith.mulf %154, %156 : vector<8x256xf32>
    %c241_i32_46 = arith.constant 241 : i32
    %158 = tpu.dynamic_rotate %132 by %c241_i32_46 dim 1 : vector<8x256xf32>, i32 -> vector<8x256xf32>
    %159 = vector.extract_strided_slice %2 {offsets = [6, 0], sizes = [1, 256], strides = [1, 1]} : vector<9x256xf32> to vector<1x256xf32>
    %160 = vector.broadcast %159 : vector<1x256xf32> to vector<8x256xf32>
    %161 = arith.mulf %158, %160 : vector<8x256xf32>
    %c240_i32_47 = arith.constant 240 : i32
    %162 = tpu.dynamic_rotate %132 by %c240_i32_47 dim 1 : vector<8x256xf32>, i32 -> vector<8x256xf32>
    %163 = vector.extract_strided_slice %2 {offsets = [7, 0], sizes = [1, 256], strides = [1, 1]} : vector<9x256xf32> to vector<1x256xf32>
    %164 = vector.broadcast %163 : vector<1x256xf32> to vector<8x256xf32>
    %165 = arith.mulf %162, %164 : vector<8x256xf32>
    %c239_i32_48 = arith.constant 239 : i32
    %166 = tpu.dynamic_rotate %132 by %c239_i32_48 dim 1 : vector<8x256xf32>, i32 -> vector<8x256xf32>
    %167 = vector.extract_strided_slice %2 {offsets = [8, 0], sizes = [1, 256], strides = [1, 1]} : vector<9x256xf32> to vector<1x256xf32>
    %168 = vector.broadcast %167 : vector<1x256xf32> to vector<8x256xf32>
    %169 = arith.mulf %166, %168 : vector<8x256xf32>
    %170 = tpu.concatenate %138, %142, %146, %150, %153, %157, %161, %165, %169 in 0 : vector<8x256xf32>, vector<8x256xf32>, vector<8x256xf32>, vector<8x256xf32>, vector<8x256xf32>, vector<8x256xf32>, vector<8x256xf32>, vector<8x256xf32>, vector<8x256xf32> -> vector<72x256xf32>
    %cst_49 = arith.constant dense<0.000000e+00> : vector<8x256xf32>
    %171 = tpu.matmul %133, %170, %cst_49 {dimension_numbers = #tpu.dot_dimension_numbers<[1], [0], [0], [1], [0, 0, 1, 1], [], []>} : vector<8x72xf32>, vector<72x256xf32>, vector<8x256xf32> -> vector<8x256xf32>
    %172 = vector.broadcast %134 : vector<8x1xf32> to vector<8x256xf32>
    %173 = arith.addf %171, %172 : vector<8x256xf32>
    %cst_50 = arith.constant 0.000000e+00 : f32
    %174 = vector.broadcast %cst_50 : f32 to vector<8x256xf32>
    %175 = arith.maximumf %173, %174 : vector<8x256xf32>
    %c0_51 = arith.constant 0 : index
    %c0_52 = arith.constant 0 : index
    %176 = vector.load %arg7[%c0_51, %c0_52] : memref<8x72xf32, #tpu.memory_space<vmem>>, vector<8x72xf32>
    %c0_53 = arith.constant 0 : index
    %c0_54 = arith.constant 0 : index
    %177 = vector.load %arg8[%c0_53, %c0_54] : memref<8x1xf32, #tpu.memory_space<vmem>>, vector<8x1xf32>
    %c17_i32_55 = arith.constant 17 : i32
    %178 = tpu.dynamic_rotate %175 by %c17_i32_55 dim 1 : vector<8x256xf32>, i32 -> vector<8x256xf32>
    %179 = vector.extract_strided_slice %2 {offsets = [0, 0], sizes = [1, 256], strides = [1, 1]} : vector<9x256xf32> to vector<1x256xf32>
    %180 = vector.broadcast %179 : vector<1x256xf32> to vector<8x256xf32>
    %181 = arith.mulf %178, %180 : vector<8x256xf32>
    %c16_i32_56 = arith.constant 16 : i32
    %182 = tpu.dynamic_rotate %175 by %c16_i32_56 dim 1 : vector<8x256xf32>, i32 -> vector<8x256xf32>
    %183 = vector.extract_strided_slice %2 {offsets = [1, 0], sizes = [1, 256], strides = [1, 1]} : vector<9x256xf32> to vector<1x256xf32>
    %184 = vector.broadcast %183 : vector<1x256xf32> to vector<8x256xf32>
    %185 = arith.mulf %182, %184 : vector<8x256xf32>
    %c15_i32_57 = arith.constant 15 : i32
    %186 = tpu.dynamic_rotate %175 by %c15_i32_57 dim 1 : vector<8x256xf32>, i32 -> vector<8x256xf32>
    %187 = vector.extract_strided_slice %2 {offsets = [2, 0], sizes = [1, 256], strides = [1, 1]} : vector<9x256xf32> to vector<1x256xf32>
    %188 = vector.broadcast %187 : vector<1x256xf32> to vector<8x256xf32>
    %189 = arith.mulf %186, %188 : vector<8x256xf32>
    %c1_i32_58 = arith.constant 1 : i32
    %190 = tpu.dynamic_rotate %175 by %c1_i32_58 dim 1 : vector<8x256xf32>, i32 -> vector<8x256xf32>
    %191 = vector.extract_strided_slice %2 {offsets = [3, 0], sizes = [1, 256], strides = [1, 1]} : vector<9x256xf32> to vector<1x256xf32>
    %192 = vector.broadcast %191 : vector<1x256xf32> to vector<8x256xf32>
    %193 = arith.mulf %190, %192 : vector<8x256xf32>
    %194 = vector.extract_strided_slice %2 {offsets = [4, 0], sizes = [1, 256], strides = [1, 1]} : vector<9x256xf32> to vector<1x256xf32>
    %195 = vector.broadcast %194 : vector<1x256xf32> to vector<8x256xf32>
    %196 = arith.mulf %175, %195 : vector<8x256xf32>
    %c255_i32_59 = arith.constant 255 : i32
    %197 = tpu.dynamic_rotate %175 by %c255_i32_59 dim 1 : vector<8x256xf32>, i32 -> vector<8x256xf32>
    %198 = vector.extract_strided_slice %2 {offsets = [5, 0], sizes = [1, 256], strides = [1, 1]} : vector<9x256xf32> to vector<1x256xf32>
    %199 = vector.broadcast %198 : vector<1x256xf32> to vector<8x256xf32>
    %200 = arith.mulf %197, %199 : vector<8x256xf32>
    %c241_i32_60 = arith.constant 241 : i32
    %201 = tpu.dynamic_rotate %175 by %c241_i32_60 dim 1 : vector<8x256xf32>, i32 -> vector<8x256xf32>
    %202 = vector.extract_strided_slice %2 {offsets = [6, 0], sizes = [1, 256], strides = [1, 1]} : vector<9x256xf32> to vector<1x256xf32>
    %203 = vector.broadcast %202 : vector<1x256xf32> to vector<8x256xf32>
    %204 = arith.mulf %201, %203 : vector<8x256xf32>
    %c240_i32_61 = arith.constant 240 : i32
    %205 = tpu.dynamic_rotate %175 by %c240_i32_61 dim 1 : vector<8x256xf32>, i32 -> vector<8x256xf32>
    %206 = vector.extract_strided_slice %2 {offsets = [7, 0], sizes = [1, 256], strides = [1, 1]} : vector<9x256xf32> to vector<1x256xf32>
    %207 = vector.broadcast %206 : vector<1x256xf32> to vector<8x256xf32>
    %208 = arith.mulf %205, %207 : vector<8x256xf32>
    %c239_i32_62 = arith.constant 239 : i32
    %209 = tpu.dynamic_rotate %175 by %c239_i32_62 dim 1 : vector<8x256xf32>, i32 -> vector<8x256xf32>
    %210 = vector.extract_strided_slice %2 {offsets = [8, 0], sizes = [1, 256], strides = [1, 1]} : vector<9x256xf32> to vector<1x256xf32>
    %211 = vector.broadcast %210 : vector<1x256xf32> to vector<8x256xf32>
    %212 = arith.mulf %209, %211 : vector<8x256xf32>
    %213 = tpu.concatenate %181, %185, %189, %193, %196, %200, %204, %208, %212 in 0 : vector<8x256xf32>, vector<8x256xf32>, vector<8x256xf32>, vector<8x256xf32>, vector<8x256xf32>, vector<8x256xf32>, vector<8x256xf32>, vector<8x256xf32>, vector<8x256xf32> -> vector<72x256xf32>
    %cst_63 = arith.constant dense<0.000000e+00> : vector<8x256xf32>
    %214 = tpu.matmul %176, %213, %cst_63 {dimension_numbers = #tpu.dot_dimension_numbers<[1], [0], [0], [1], [0, 0, 1, 1], [], []>} : vector<8x72xf32>, vector<72x256xf32>, vector<8x256xf32> -> vector<8x256xf32>
    %215 = vector.broadcast %177 : vector<8x1xf32> to vector<8x256xf32>
    %216 = arith.addf %214, %215 : vector<8x256xf32>
    %cst_64 = arith.constant 0.000000e+00 : f32
    %217 = vector.broadcast %cst_64 : f32 to vector<8x256xf32>
    %218 = arith.maximumf %216, %217 : vector<8x256xf32>
    %219 = arith.addf %132, %218 : vector<8x256xf32>
    %c0_65 = arith.constant 0 : index
    %c0_66 = arith.constant 0 : index
    %220 = vector.load %arg9[%c0_65, %c0_66] : memref<4x72xf32, #tpu.memory_space<vmem>>, vector<4x72xf32>
    %c0_67 = arith.constant 0 : index
    %c0_68 = arith.constant 0 : index
    %221 = vector.load %arg10[%c0_67, %c0_68] : memref<4x1xf32, #tpu.memory_space<vmem>>, vector<4x1xf32>
    %c17_i32_69 = arith.constant 17 : i32
    %222 = tpu.dynamic_rotate %219 by %c17_i32_69 dim 1 : vector<8x256xf32>, i32 -> vector<8x256xf32>
    %223 = vector.extract_strided_slice %2 {offsets = [0, 0], sizes = [1, 256], strides = [1, 1]} : vector<9x256xf32> to vector<1x256xf32>
    %224 = vector.broadcast %223 : vector<1x256xf32> to vector<8x256xf32>
    %225 = arith.mulf %222, %224 : vector<8x256xf32>
    %c16_i32_70 = arith.constant 16 : i32
    %226 = tpu.dynamic_rotate %219 by %c16_i32_70 dim 1 : vector<8x256xf32>, i32 -> vector<8x256xf32>
    %227 = vector.extract_strided_slice %2 {offsets = [1, 0], sizes = [1, 256], strides = [1, 1]} : vector<9x256xf32> to vector<1x256xf32>
    %228 = vector.broadcast %227 : vector<1x256xf32> to vector<8x256xf32>
    %229 = arith.mulf %226, %228 : vector<8x256xf32>
    %c15_i32_71 = arith.constant 15 : i32
    %230 = tpu.dynamic_rotate %219 by %c15_i32_71 dim 1 : vector<8x256xf32>, i32 -> vector<8x256xf32>
    %231 = vector.extract_strided_slice %2 {offsets = [2, 0], sizes = [1, 256], strides = [1, 1]} : vector<9x256xf32> to vector<1x256xf32>
    %232 = vector.broadcast %231 : vector<1x256xf32> to vector<8x256xf32>
    %233 = arith.mulf %230, %232 : vector<8x256xf32>
    %c1_i32_72 = arith.constant 1 : i32
    %234 = tpu.dynamic_rotate %219 by %c1_i32_72 dim 1 : vector<8x256xf32>, i32 -> vector<8x256xf32>
    %235 = vector.extract_strided_slice %2 {offsets = [3, 0], sizes = [1, 256], strides = [1, 1]} : vector<9x256xf32> to vector<1x256xf32>
    %236 = vector.broadcast %235 : vector<1x256xf32> to vector<8x256xf32>
    %237 = arith.mulf %234, %236 : vector<8x256xf32>
    %238 = vector.extract_strided_slice %2 {offsets = [4, 0], sizes = [1, 256], strides = [1, 1]} : vector<9x256xf32> to vector<1x256xf32>
    %239 = vector.broadcast %238 : vector<1x256xf32> to vector<8x256xf32>
    %240 = arith.mulf %219, %239 : vector<8x256xf32>
    %c255_i32_73 = arith.constant 255 : i32
    %241 = tpu.dynamic_rotate %219 by %c255_i32_73 dim 1 : vector<8x256xf32>, i32 -> vector<8x256xf32>
    %242 = vector.extract_strided_slice %2 {offsets = [5, 0], sizes = [1, 256], strides = [1, 1]} : vector<9x256xf32> to vector<1x256xf32>
    %243 = vector.broadcast %242 : vector<1x256xf32> to vector<8x256xf32>
    %244 = arith.mulf %241, %243 : vector<8x256xf32>
    %c241_i32_74 = arith.constant 241 : i32
    %245 = tpu.dynamic_rotate %219 by %c241_i32_74 dim 1 : vector<8x256xf32>, i32 -> vector<8x256xf32>
    %246 = vector.extract_strided_slice %2 {offsets = [6, 0], sizes = [1, 256], strides = [1, 1]} : vector<9x256xf32> to vector<1x256xf32>
    %247 = vector.broadcast %246 : vector<1x256xf32> to vector<8x256xf32>
    %248 = arith.mulf %245, %247 : vector<8x256xf32>
    %c240_i32_75 = arith.constant 240 : i32
    %249 = tpu.dynamic_rotate %219 by %c240_i32_75 dim 1 : vector<8x256xf32>, i32 -> vector<8x256xf32>
    %250 = vector.extract_strided_slice %2 {offsets = [7, 0], sizes = [1, 256], strides = [1, 1]} : vector<9x256xf32> to vector<1x256xf32>
    %251 = vector.broadcast %250 : vector<1x256xf32> to vector<8x256xf32>
    %252 = arith.mulf %249, %251 : vector<8x256xf32>
    %c239_i32_76 = arith.constant 239 : i32
    %253 = tpu.dynamic_rotate %219 by %c239_i32_76 dim 1 : vector<8x256xf32>, i32 -> vector<8x256xf32>
    %254 = vector.extract_strided_slice %2 {offsets = [8, 0], sizes = [1, 256], strides = [1, 1]} : vector<9x256xf32> to vector<1x256xf32>
    %255 = vector.broadcast %254 : vector<1x256xf32> to vector<8x256xf32>
    %256 = arith.mulf %253, %255 : vector<8x256xf32>
    %257 = tpu.concatenate %225, %229, %233, %237, %240, %244, %248, %252, %256 in 0 : vector<8x256xf32>, vector<8x256xf32>, vector<8x256xf32>, vector<8x256xf32>, vector<8x256xf32>, vector<8x256xf32>, vector<8x256xf32>, vector<8x256xf32>, vector<8x256xf32> -> vector<72x256xf32>
    %cst_77 = arith.constant dense<0.000000e+00> : vector<4x256xf32>
    %258 = tpu.matmul %220, %257, %cst_77 {dimension_numbers = #tpu.dot_dimension_numbers<[1], [0], [0], [1], [0, 0, 1, 1], [], []>} : vector<4x72xf32>, vector<72x256xf32>, vector<4x256xf32> -> vector<4x256xf32>
    %259 = vector.broadcast %221 : vector<4x1xf32> to vector<4x256xf32>
    %260 = arith.addf %258, %259 : vector<4x256xf32>
    %261 = arith.negf %260 : vector<4x256xf32>
    %262 = math.exp %261 : vector<4x256xf32>
    %cst_78 = arith.constant 1.000000e+00 : f32
    %263 = vector.broadcast %cst_78 : f32 to vector<4x256xf32>
    %264 = arith.addf %263, %262 : vector<4x256xf32>
    %265 = arith.divf %263, %264 : vector<4x256xf32>
    %266 = arith.subf %1, %265 : vector<4x256xf32>
    %c0_79 = arith.constant 0 : index
    %c0_80 = arith.constant 0 : index
    %c0_81 = arith.constant 0 : index
    %267 = vector.load %arg11[%c0_79, %c0_80, %c0_81] : memref<1x4x256xf32, #tpu.memory_space<vmem>>, vector<1x4x256xf32>
    %268 = vector.shape_cast %267 : vector<1x4x256xf32> to vector<4x256xf32>
    %269 = vector.shape_cast %266 : vector<4x256xf32> to vector<1x4x256xf32>
    tpu.vector_store %arg11[%c0_79, %c0_80, %c0_81], %269 {strides = array<i32>} : memref<1x4x256xf32, #tpu.memory_space<vmem>>, vector<1x4x256xf32>,
    return
  }
  func.func @transform_0(%arg0: i32) -> (i32, i32, i32) {
    %c0_i32 = arith.constant 0 : i32
    %c0_i32_0 = arith.constant 0 : i32
    %c0_i32_1 = arith.constant 0 : i32
    return %arg0, %c0_i32, %c0_i32_0 : i32, i32, i32
  }
  func.func @transform_1(%arg0: i32) -> (i32, i32) {
    %c0_i32 = arith.constant 0 : i32
    %c0_i32_0 = arith.constant 0 : i32
    %c0_i32_1 = arith.constant 0 : i32
    return %c0_i32, %c0_i32_0 : i32, i32
  }
  func.func @transform_2(%arg0: i32) -> (i32, i32) {
    %c0_i32 = arith.constant 0 : i32
    %c0_i32_0 = arith.constant 0 : i32
    %c0_i32_1 = arith.constant 0 : i32
    return %c0_i32, %c0_i32_0 : i32, i32
  }
  func.func @transform_3(%arg0: i32) -> (i32, i32) {
    %c0_i32 = arith.constant 0 : i32
    %c0_i32_0 = arith.constant 0 : i32
    %c0_i32_1 = arith.constant 0 : i32
    return %c0_i32, %c0_i32_0 : i32, i32
  }
  func.func @transform_4(%arg0: i32) -> (i32, i32) {
    %c0_i32 = arith.constant 0 : i32
    %c0_i32_0 = arith.constant 0 : i32
    %c0_i32_1 = arith.constant 0 : i32
    return %c0_i32, %c0_i32_0 : i32, i32
  }
  func.func @transform_5(%arg0: i32) -> (i32, i32) {
    %c0_i32 = arith.constant 0 : i32
    %c0_i32_0 = arith.constant 0 : i32
    %c0_i32_1 = arith.constant 0 : i32
    return %c0_i32, %c0_i32_0 : i32, i32
  }
  func.func @transform_6(%arg0: i32) -> (i32, i32) {
    %c0_i32 = arith.constant 0 : i32
    %c0_i32_0 = arith.constant 0 : i32
    %c0_i32_1 = arith.constant 0 : i32
    return %c0_i32, %c0_i32_0 : i32, i32
  }
  func.func @transform_7(%arg0: i32) -> (i32, i32) {
    %c0_i32 = arith.constant 0 : i32
    %c0_i32_0 = arith.constant 0 : i32
    %c0_i32_1 = arith.constant 0 : i32
    return %c0_i32, %c0_i32_0 : i32, i32
  }
  func.func @transform_8(%arg0: i32) -> (i32, i32) {
    %c0_i32 = arith.constant 0 : i32
    %c0_i32_0 = arith.constant 0 : i32
    %c0_i32_1 = arith.constant 0 : i32
    return %c0_i32, %c0_i32_0 : i32, i32
  }
  func.func @transform_9(%arg0: i32) -> (i32, i32) {
    %c0_i32 = arith.constant 0 : i32
    %c0_i32_0 = arith.constant 0 : i32
    %c0_i32_1 = arith.constant 0 : i32
    return %c0_i32, %c0_i32_0 : i32, i32
  }
  func.func @transform_10(%arg0: i32) -> (i32, i32, i32) {
    %c0_i32 = arith.constant 0 : i32
    %c0_i32_0 = arith.constant 0 : i32
    %c0_i32_1 = arith.constant 0 : i32
    return %arg0, %c0_i32, %c0_i32_0 : i32, i32, i32
  }
}

</mosaic_0001>

<bundles_post_ra>
// kernel: calibrate_network_forward.1
= control target key start
LH: loop header
LB: loop body
LE: loop exit
PB: predicated region body
PF: predicated region fallthrough
CT: control target
= control target key end

     0   :  { %s1576_s13 = smov 0   ;;  %s2218_s0 = inlined_call_operand.vmem [shape: f32[2,4,256], index: 0, kind: input, shape index: {}]   ;;  %s2219_s1 = inlined_call_operand.vmem [shape: f32[9,256], index: 1, kind: input, shape index: {}]   ;;  %s2220_s2 = inlined_call_operand.vmem [shape: f32[8,36], index: 2, kind: input, shape index: {}]   ;;  %s2221_s3 = inlined_call_operand.vmem [shape: f32[8,1], index: 3, kind: input, shape index: {}]   ;;  %s2222_s4 = inlined_call_operand.vmem [shape: f32[8,72], index: 4, kind: input, shape index: {}]   ;;  %s2223_s5 = inlined_call_operand.vmem [shape: f32[8,1], index: 5, kind: input, shape index: {}]   ;;  %s2224_s6 = inlined_call_operand.vmem [shape: f32[8,72], index: 6, kind: input, shape index: {}]   ;;  %s2225_s7 = inlined_call_operand.vmem [shape: f32[8,1], index: 7, kind: input, shape index: {}]   ;;  %s2226_s8 = inlined_call_operand.vmem [shape: f32[4,72], index: 8, kind: input, shape index: {}]   ;;  %s2227_s9 = inlined_call_operand.vmem [shape: f32[4,1], index: 9, kind: input, shape index: {}]   ;;  %s2228_s10 = inlined_call_operand.vmem [shape: f32[2,4,256], index: 10, kind: output, shape index: {}]  }
   0x1 LB: > { %s1446_s14 = sadd.s32 4294967295, %s1509_s13   ;;  %p1450_p0 = scmp.ge.s32.totalorder %s1509_s13, 1  ;;  %s1509_s13 = sphi %s1576_s13, %s20_s13  }
   0x2   : > { %p312_p1 = scmp.lt.s32.totalorder %s1509_s13, 3 }
   0x4   : > { %p313_p2 = pnand %p1450_p0, %p312_p1 }
   0x5   : > { %p350_p3 = scmp.lt.s32.totalorder (!%p313_p2), %s1446_s14, 1  ;;  %s1511_s19 = smov (!%p313_p2), 111  }
   0x6   : > { %316 = sbr.rel (%p313_p2) target bundleno = 2139 (0x85b), region = 60  ;;  %s1512_s20 = smov (!%p313_p2), 112  }
   0x7   : > { %s1513_s21 = smov (!%p313_p2), 127   ;;  %s1514_s22 = smov (!%p313_p2), 113  }
   0x8   : > { %s1515_s23 = smov (!%p313_p2), 1   ;;  %s1516_s24 = smov (!%p313_p2), 16  }
   0x9   : > { %s1519_s25 = smov (!%p313_p2), 15   ;;  %s1520_s26 = smov (!%p313_p2), 17  }
   0xb   : > { %s2230_s14 = smov (!%p350_p3, %s1446_s14), 1  ;;  %v1517_v2 = vmov 0.0   ;;  %v1518_v3 = vmov 0   ;;  %v366_v4 = vld [vmem:[%s2221_s3] sm:$0xff]  ;;  %v374_v5 = vlaneseq  ;;  %v1639_v9 = vld [vmem:[%s2219_s1 + $0x8] sm:$0xff]  ;;  %vm548_vm1 = vcmask 1043456  }
   0xc   : > { %s1469_s15 = sshll.u32 %s2230_s14, 3  ;;  %636 = vmatprep.mubr.f32.mxu0 %v1517_v2  ;;  %786 = vmatprep.mubr.f32.mxu1 %v1517_v2  ;;  %v1634_v8 = vld [vmem:[%s2219_s1] sm:$0xff]  ;;  %v1655_v17 = vld [vmem:[%s2219_s1 + $0x10] ss:$0 sm:$0xff]  ;;  %v1660_v18 = vld [vmem:[%s2219_s1 + $0x18] ss:$0 sm:$0xff] }
   0xd   : > { %s1592_s18 = scalar_lea.vmem %s2218_s0, %s1469_s15  ;;  %1489 = vset.pattern.permute.xlu0 %v1518_v3  ;;  %1490 = vset.pattern.permute.xlu1 %v1518_v3  ;;  %v1628_v6 = vshrl.u32 %v374_v5, 7  ;;  %v1641_v10 = vand.u32 127, %v374_v5  ;;  %vm562_vm9 = vcmask 293888   ;;  %vm718_vm10 = vcmask 588800   ;;  %s359_s16 = scalar_lea.vmem %s2228_s10, %s1469_s15 }
   0xe   : > { %v1595_v0 = vld [vmem:[%s1592_s18] sm:$0xff] }
   0xf   : > { %504 = vrot.lane.b32.xlu1 %v1595_v0, %s1511_s19  ;;  %487 = vrot.lane.b32.xlu0 %v1595_v0, %s1512_s20  ;;  %v368_v1 = vcombine.high %v1595_v0, %v1595_v0  ;;  %v442_v7 = vsub.s32 4, %v1628_v6  ;;  %v462_v15 = vsub.s32 5, %v1628_v6  ;;  %vm508_vm0 = vcmp.lt.s32.totalorder %v1641_v10, 111 }
  0x10   : > { %v496_v16 = vsub.s32 7, %v1628_v6  ;;  %vm457_vm2 = vcmp.lt.s32.totalorder %v1641_v10, 127  ;;  %v479_v21 = vsub.s32 6, %v1628_v6  ;;  %vm491_vm3 = vcmp.lt.s32.totalorder %v1641_v10, 112 }
  0x11   : > { %v1644_v13 = vrot.slane %v1634_v8, %v442_v7  ;;  %v1647_v14 = vrot.slane %v1639_v9, %v442_v7  ;;  %v1671_v25 = vrot.slane %v1639_v9, %v462_v15  ;;  %v1683_v30 = vrot.slane %v1634_v8, %v462_v15 }
  0x12   : > { %v1677_v28 = vrot.slane %v1634_v8, %v496_v16  ;;  %v1680_v29 = vrot.slane %v1639_v9, %v496_v16  ;;  %vm474_vm4 = vcmp.lt.s32.totalorder %v1641_v10, 113  ;;  %v1688_v33 = vrot.slane %v1634_v8, %v479_v21 }
  0x13   : > { %453 = vrot.lane.b32.xlu0 %v1595_v0, %s1513_s21  ;;  %506 = vrot.lane.b32.xlu1 %v368_v1, %s1511_s19  ;;  %v450_v22 = vcombine.low %v1644_v13, %v1647_v14  ;;  %v1704_v42 = vrot.slane %v1639_v9, %v479_v21  ;;  %v432_v46 = vsub.s32 3, %v1628_v6  ;;  %vm427_vm5 = vcmp.lt.s32.totalorder %v1641_v10, 1 }
  0x14   : > { %v398_v62 = vsub.s32 1, %v1628_v6  ;;  %v415_v3 = vsub.s32 2, %v1628_v6  ;;  %vm393_vm6 = vcmp.lt.s32.totalorder %v1641_v10, 16  ;;  %vm410_vm7 = vcmp.lt.s32.totalorder %v1641_v10, 15 }
  0x15   : > { %v452_v34 = vmul.f32 %v450_v22, %v1595_v0  ;;  %v1718_v60 = vrot.slane %v1634_v8, %v432_v46  ;;  %v1721_v61 = vrot.slane %v1639_v9, %v432_v46  ;;  %vm376_vm8 = vcmp.lt.s32.totalorder %v1641_v10, 17 }
  0x16   : > { %v1736_v16 = vrot.slane %v1634_v8, %v398_v62  ;;  %v1746_v21 = vrot.slane %v1639_v9, %v415_v3 }
  0x17   : > { %455 = vrot.lane.b32.xlu1 %v368_v1, %s1513_s21  ;;  %489 = vrot.lane.b32.xlu0 %v368_v1, %s1512_s20  ;;  %v534_v50 = vcombine.high %v452_v34, %v452_v34 }
  0x1b   : > { %472 = vrot.lane.b32.xlu1 %v368_v1, %s1514_s22  ;;  %470 = vrot.lane.b32.xlu0 %v1595_v0, %s1514_s22 }
  0x1f   : > { %425 = vrot.lane.b32.xlu1 %v368_v1, %s1515_s23  ;;  %423 = vrot.lane.b32.xlu0 %v1595_v0, %s1515_s23 }
  0x23   : > { %391 = vrot.lane.b32.xlu1 %v368_v1, %s1516_s24  ;;  %389 = vrot.lane.b32.xlu0 %v1595_v0, %s1516_s24 }
  0x27   : > { %408 = vrot.lane.b32.xlu1 %v368_v1, %s1519_s25  ;;  %406 = vrot.lane.b32.xlu0 %v1595_v0, %s1519_s25 }
  0x2b   : > { %372 = vrot.lane.b32.xlu1 %v368_v1, %s1520_s26  ;;  %370 = vrot.lane.b32.xlu0 %v1595_v0, %s1520_s26 }
  0x2f   : > { %559 = vperm.xlu0 %1489, %v366_v4  }
  0x81   : > { %v505_v11 = vpop.permute.xlu1 %504  ;;  %v488_v12 = vpop.permute.xlu0 %487 }
  0x85   : > { %v454_v19 = vpop.permute.xlu0 %453  ;;  %v507_v20 = vpop.permute.xlu1 %506 }
  0x86   : > { %v509_v23 = vsel %vm508_vm0, %v505_v11, %v507_v20  ;;  %v510_v24 = vsel %vm508_vm0, %v507_v20, %v505_v11  ;;  %v381_v11 = vsub.s32 0, %v1628_v6  ;;  %v1743_v20 = vrot.slane %v1634_v8, %v415_v3 }
  0x87   : > { %v519_v26 = vmul.f32 %v1655_v17, %v509_v23  ;;  %v520_v27 = vmul.f32 %v1660_v18, %v510_v24 }
  0x89   : > { %1457 = vmatprep.subr.msk.mxu0 %vm548_vm1, %v520_v27  ;;  %v456_v31 = vpop.permute.xlu1 %455  ;;  %v490_v32 = vpop.permute.xlu0 %489  ;;  %v1757_v27 = vrot.slane %v1639_v9, %v381_v11 }
  0x8a   : > { %v458_v35 = vsel %vm457_vm2, %v454_v19, %v456_v31  ;;  %v459_v36 = vsel %vm457_vm2, %v456_v31, %v454_v19  ;;  %v492_v37 = vsel %vm491_vm3, %v488_v12, %v490_v32  ;;  %v493_v38 = vsel %vm491_vm3, %v490_v32, %v488_v12  ;;  %1458 = vmatpush1.msk.msra.mxu0 %vm548_vm1, %v519_v26 }
  0x8b   : > { %v469_v39 = vmul.f32 %v1671_v25, %v459_v36  ;;  %v502_v40 = vmul.f32 %v1677_v28, %v492_v37  ;;  %v503_v41 = vmul.f32 %v1680_v29, %v493_v38  ;;  %v468_v43 = vmul.f32 %v1683_v30, %v458_v35 }
  0x8c   : > { %v1739_v19 = vrot.slane %v1639_v9, %v398_v62  ;;  %v1754_v26 = vrot.slane %v1634_v8, %v381_v11 }
  0x8d   : > { %v473_v44 = vpop.permute.xlu1 %472  ;;  %v471_v45 = vpop.permute.xlu0 %470  ;;  %v539_v47 = vrot.slane %v469_v39, 4  ;;  %v544_v51 = vrot.slane %v502_v40, 4  ;;  %v545_v52 = vrot.slane %v503_v41, 4  ;;  %v538_v55 = vrot.slane %v468_v43, 4 }
  0x8e   : > { %v475_v48 = vsel %vm474_vm4, %v471_v45, %v473_v44  ;;  %v476_v49 = vsel %vm474_vm4, %v473_v44, %v471_v45 }
  0x8f   : > { %v485_v53 = vmul.f32 %v1688_v33, %v475_v48  ;;  %v486_v54 = vmul.f32 %v1704_v42, %v476_v49  ;;  %v554_v1 = vsel %vm548_vm1, %v534_v50, %v539_v47  ;;  %v553_v4 = vsel %vm548_vm1, %v452_v34, %v538_v55 }
  0x91   : > { %v426_v56 = vpop.permute.xlu1 %425  ;;  %v424_v57 = vpop.permute.xlu0 %423  ;;  %v556_v58 = vsel %vm548_vm1, %v486_v54, %v545_v52  ;;  %v555_v59 = vsel %vm548_vm1, %v485_v53, %v544_v51  ;;  %v365_v51 = vld [vmem:[%s2220_s2] sm:$0xff] }
  0x92   : > { %596 = vmatprep.subr.mxu0 %v556_v58  ;;  %v428_v63 = vsel %vm427_vm5, %v424_v57, %v426_v56  ;;  %v429_v0 = vsel %vm427_vm5, %v426_v56, %v424_v57 }
  0x93   : > { %597 = vmatpush1.msra.mxu0 %v555_v59  ;;  %v438_v12 = vmul.f32 %v1718_v60, %v429_v0  ;;  %v439_v15 = vmul.f32 %v1721_v61, %v428_v63  ;;  %v646_v59 = vld [vmem:[%s2223_s5] sm:$0xff] }
  0x94   : > { %598 = vmatprep.subr.mxu0 %v554_v1 }
  0x95   : > { %v392_v5 = vpop.permute.xlu1 %391  ;;  %599 = vmatpush1.msra.mxu0 %v553_v4  ;;  %v390_v7 = vpop.permute.xlu0 %389  ;;  %v529_v31 = vrot.slane %v438_v12, 4  ;;  %v530_v32 = vrot.slane %v439_v15, 4 }
  0x96   : > { %v394_v6 = vsel %vm393_vm6, %v390_v7, %v392_v5  ;;  %v395_v22 = vsel %vm393_vm6, %v392_v5, %v390_v7 }
  0x97   : > { %v404_v36 = vmul.f32 %v1736_v16, %v395_v22  ;;  %v405_v37 = vmul.f32 %v1739_v19, %v394_v6 }
  0x99   : > { %v409_v23 = vpop.permute.xlu1 %408  ;;  %v407_v24 = vpop.permute.xlu0 %406  ;;  %v523_v45 = vrot.slane %v404_v36, 4  ;;  %v524_v46 = vrot.slane %v405_v37, 4 }
  0x9a   : > { %v411_v34 = vsel %vm410_vm7, %v407_v24, %v409_v23  ;;  %v412_v35 = vsel %vm410_vm7, %v409_v23, %v407_v24 }
  0x9b   : > { %v421_v38 = vmul.f32 %v1743_v20, %v412_v35  ;;  %v422_v8 = vmul.f32 %v1746_v21, %v411_v34 }
  0x9d   : > { %v373_v39 = vpop.permute.xlu1 %372  ;;  %v371_v40 = vpop.permute.xlu0 %370  ;;  %v552_v9 = vsel %vm548_vm1, %v422_v8, %v530_v32  ;;  %v551_v41 = vsel %vm548_vm1, %v421_v38, %v529_v31 }
  0x9e   : > { %v377_v43 = vsel %vm376_vm8, %v371_v40, %v373_v39  ;;  %v378_v44 = vsel %vm376_vm8, %v373_v39, %v371_v40  ;;  %600 = vmatprep.subr.mxu0 %v552_v9 }
  0x9f   : > { %v387_v47 = vmul.f32 %v1754_v26, %v378_v44  ;;  %v388_v48 = vmul.f32 %v1757_v27, %v377_v43  ;;  %601 = vmatpush1.msra.mxu0 %v551_v41 }
  0xa1   : > { %v550_v49 = vsel %vm548_vm1, %v388_v48, %v524_v46  ;;  %v549_v50 = vsel %vm548_vm1, %v387_v47, %v523_v45 }
  0xa2   : > { %602 = vmatprep.subr.mxu0 %v550_v49 }
  0xa3   : > { %603 = vmatpush1.msra.mxu0 %v549_v50 }
  0xa4   : > { %1459 = vmatmul.mubr.msk.f32.vlgmr.msra.gmra.mxu0 %vm562_vm9, %v365_v51 }
  0xa5   : > { %935 = vmatprep.mubr.f32.mxu0 %v1517_v2 }
  0xaa   : > { %v560_v52 = vpop.permute.xlu0 %559 }
 0x164   : > { %v638_v53 = vpop.f32.mrf.mxu0 }
 0x165   : > { %v639_v54 = vadd.f32 %v638_v53, %v560_v52 }
 0x166   : > { %v640_v55 = vpop.f32.mrf.mxu0 }
 0x167   : > { %v1781_v56 = vmax.f32 %v639_v54, 0.0  ;;  %v641_v57 = vadd.f32 %v640_v55, %v560_v52 }
 0x169   : > { %697 = vrot.lane.b32.xlu0 %v1781_v56, %s1512_s20  ;;  %705 = vrot.lane.b32.xlu1 %v1781_v56, %s1511_s19  ;;  %v1787_v58 = vmax.f32 %v641_v57, 0.0  ;;  %v679_v46 = vmul.f32 %v1781_v56, %v1644_v13 }
 0x16b   : > { %v680_v43 = vmul.f32 %v1787_v58, %v1647_v14 }
 0x16d   : > { %689 = vrot.lane.b32.xlu0 %v1781_v56, %s1514_s22  ;;  %707 = vrot.lane.b32.xlu1 %v1787_v58, %s1511_s19 }
 0x171   : > { %681 = vrot.lane.b32.xlu0 %v1781_v56, %s1513_s21  ;;  %699 = vrot.lane.b32.xlu1 %v1787_v58, %s1512_s20 }
 0x175   : > { %671 = vrot.lane.b32.xlu0 %v1781_v56, %s1515_s23  ;;  %691 = vrot.lane.b32.xlu1 %v1787_v58, %s1514_s22 }
 0x179   : > { %663 = vrot.lane.b32.xlu0 %v1781_v56, %s1519_s25  ;;  %683 = vrot.lane.b32.xlu1 %v1787_v58, %s1513_s21 }
 0x17d   : > { %655 = vrot.lane.b32.xlu0 %v1781_v56, %s1516_s24  ;;  %673 = vrot.lane.b32.xlu1 %v1787_v58, %s1515_s23 }
 0x181   : > { %647 = vrot.lane.b32.xlu0 %v1781_v56, %s1520_s26  ;;  %665 = vrot.lane.b32.xlu1 %v1787_v58, %s1519_s25 }
 0x185   : > { %715 = vperm.xlu0 %1489, %v646_v59   ;;  %657 = vrot.lane.b32.xlu1 %v1787_v58, %s1516_s24 }
 0x189   : > { %649 = vrot.lane.b32.xlu1 %v1787_v58, %s1520_s26 }
 0x1db   : > { %v698_v62 = vpop.permute.xlu0 %697  ;;  %v706_v63 = vpop.permute.xlu1 %705 }
 0x1df   : > { %v690_v0 = vpop.permute.xlu0 %689  ;;  %v708_v1 = vpop.permute.xlu1 %707 }
 0x1e0   : > { %v709_v3 = vsel %vm508_vm0, %v706_v63, %v708_v1  ;;  %v710_v4 = vsel %vm508_vm0, %v708_v1, %v706_v63 }
 0x1e1   : > { %v712_v5 = vmul.f32 %v1660_v18, %v710_v4  ;;  %v711_v7 = vmul.f32 %v1655_v17, %v709_v3 }
 0x1e3   : > { %v682_v11 = vpop.permute.xlu0 %681  ;;  %736 = vmatprep.subr.mxu1 %v712_v5  ;;  %v700_v12 = vpop.permute.xlu1 %699 }
 0x1e4   : > { %v701_v15 = vsel %vm491_vm3, %v698_v62, %v700_v12  ;;  %v702_v6 = vsel %vm491_vm3, %v700_v12, %v698_v62  ;;  %737 = vmatpush1.msra.mxu1 %v711_v7 }
 0x1e5   : > { %v703_v22 = vmul.f32 %v701_v15, %v1677_v28  ;;  %v704_v23 = vmul.f32 %v702_v6, %v1680_v29 }
 0x1e7   : > { %738 = vmatprep.subr.mxu1 %v704_v23  ;;  %v692_v24 = vpop.permute.xlu1 %691  ;;  %v672_v34 = vpop.permute.xlu0 %671 }
 0x1e8   : > { %v693_v31 = vsel %vm474_vm4, %v690_v0, %v692_v24  ;;  %v694_v32 = vsel %vm474_vm4, %v692_v24, %v690_v0  ;;  %739 = vmatpush1.msra.mxu1 %v703_v22 }
 0x1e9   : > { %v695_v35 = vmul.f32 %v693_v31, %v1688_v33  ;;  %v696_v36 = vmul.f32 %v694_v32, %v1704_v42  ;;  %v796_v32 = vld [vmem:[%s2225_s7] sm:$0xff] }
 0x1eb   : > { %740 = vmatprep.subr.mxu1 %v696_v36  ;;  %v684_v37 = vpop.permute.xlu1 %683  ;;  %v664_v9 = vpop.permute.xlu0 %663 }
 0x1ec   : > { %v685_v38 = vsel %vm457_vm2, %v682_v11, %v684_v37  ;;  %v686_v8 = vsel %vm457_vm2, %v684_v37, %v682_v11  ;;  %741 = vmatpush1.msra.mxu1 %v695_v35  ;;  %v1875_v11 = vld [vmem:[%s2222_s4] sm:$0xff] }
 0x1ed   : > { %v687_v39 = vmul.f32 %v685_v38, %v1683_v30  ;;  %v688_v40 = vmul.f32 %v686_v8, %v1671_v25 }
 0x1ef   : > { %742 = vmatprep.subr.mxu1 %v688_v40  ;;  %v674_v41 = vpop.permute.xlu1 %673  ;;  %v656_v52 = vpop.permute.xlu0 %655 }
 0x1f0   : > { %v675_v44 = vsel %vm427_vm5, %v672_v34, %v674_v41  ;;  %v676_v45 = vsel %vm427_vm5, %v674_v41, %v672_v34  ;;  %743 = vmatpush1.msra.mxu1 %v687_v39 }
 0x1f1   : > { %v677_v47 = vmul.f32 %v676_v45, %v1718_v60  ;;  %v678_v48 = vmul.f32 %v675_v44, %v1721_v61  ;;  %744 = vmatprep.subr.mxu1 %v680_v43 }
 0x1f2   : > { %745 = vmatpush1.msra.mxu1 %v679_v46 }
 0x1f3   : > { %v666_v49 = vpop.permute.xlu1 %665  ;;  %746 = vmatprep.subr.mxu1 %v678_v48  ;;  %v648_v0 = vpop.permute.xlu0 %647 }
 0x1f4   : > { %v667_v50 = vsel %vm410_vm7, %v664_v9, %v666_v49  ;;  %v668_v51 = vsel %vm410_vm7, %v666_v49, %v664_v9  ;;  %747 = vmatpush1.msra.mxu1 %v677_v47 }
 0x1f5   : > { %v669_v53 = vmul.f32 %v668_v51, %v1743_v20  ;;  %v670_v54 = vmul.f32 %v667_v50, %v1746_v21 }
 0x1f7   : > { %v658_v55 = vpop.permute.xlu1 %657  ;;  %748 = vmatprep.subr.mxu1 %v670_v54 }
 0x1f8   : > { %v659_v57 = vsel %vm393_vm6, %v656_v52, %v658_v55  ;;  %v660_v59 = vsel %vm393_vm6, %v658_v55, %v656_v52  ;;  %749 = vmatpush1.msra.mxu1 %v669_v53 }
 0x1f9   : > { %v661_v62 = vmul.f32 %v660_v59, %v1736_v16  ;;  %v662_v63 = vmul.f32 %v659_v57, %v1739_v19 }
 0x1fb   : > { %v650_v1 = vpop.permute.xlu1 %649  ;;  %750 = vmatprep.subr.mxu1 %v662_v63 }
 0x1fc   : > { %v651_v3 = vsel %vm376_vm8, %v648_v0, %v650_v1  ;;  %v652_v4 = vsel %vm376_vm8, %v650_v1, %v648_v0  ;;  %751 = vmatpush1.msra.mxu1 %v661_v62 }
 0x1fd   : > { %v653_v5 = vmul.f32 %v652_v4, %v1754_v26  ;;  %v654_v7 = vmul.f32 %v651_v3, %v1757_v27 }
 0x1ff   : > { %752 = vmatprep.subr.mxu1 %v654_v7 }
 0x200   : > { %753 = vmatpush1.msra.mxu1 %v653_v5  ;;  %v1880_v12 = vpop.permute.xlu0 %715 }
 0x201   : > { %1460 = vmatmul.mubr.msk.f32.vlgmr.msra.gmra.mxu1 %vm718_vm10, %v1875_v11 }
 0x202   : > { %1076 = vmatprep.mubr.f32.mxu1 %v1517_v2 }
 0x2c1   : > { %v788_v15 = vpop.f32.mrf.mxu1 }
 0x2c2   : > { %v789_v6 = vadd.f32 %v788_v15, %v1880_v12 }
 0x2c3   : > { %v790_v22 = vpop.f32.mrf.mxu1 }
 0x2c4   : > { %v793_v23 = vmax.f32 %v789_v6, 0.0  ;;  %v791_v24 = vadd.f32 %v790_v22, %v1880_v12 }
 0x2c6   : > { %v794_v31 = vmax.f32 %v791_v24, 0.0  ;;  %855 = vrot.lane.b32.xlu1 %v793_v23, %s1511_s19  ;;  %v829_v3 = vmul.f32 %v793_v23, %v1644_v13 }
 0x2c8   : > { %857 = vrot.lane.b32.xlu0 %v794_v31, %s1511_s19  ;;  %v830_v63 = vmul.f32 %v794_v31, %v1647_v14 }
 0x2ca   : > { %847 = vrot.lane.b32.xlu1 %v793_v23, %s1512_s20 }
 0x2cc   : > { %849 = vrot.lane.b32.xlu0 %v794_v31, %s1512_s20 }
 0x2ce   : > { %839 = vrot.lane.b32.xlu1 %v793_v23, %s1514_s22 }
 0x2d0   : > { %841 = vrot.lane.b32.xlu0 %v794_v31, %s1514_s22 }
 0x2d2   : > { %831 = vrot.lane.b32.xlu1 %v793_v23, %s1513_s21 }
 0x2d4   : > { %833 = vrot.lane.b32.xlu0 %v794_v31, %s1513_s21 }
 0x2d6   : > { %821 = vrot.lane.b32.xlu1 %v793_v23, %s1515_s23 }
 0x2d8   : > { %823 = vrot.lane.b32.xlu0 %v794_v31, %s1515_s23 }
 0x2da   : > { %813 = vrot.lane.b32.xlu1 %v793_v23, %s1519_s25 }
 0x2dc   : > { %815 = vrot.lane.b32.xlu0 %v794_v31, %s1519_s25 }
 0x2de   : > { %805 = vrot.lane.b32.xlu1 %v793_v23, %s1516_s24 }
 0x2e0   : > { %807 = vrot.lane.b32.xlu0 %v794_v31, %s1516_s24 }
 0x2e2   : > { %797 = vrot.lane.b32.xlu1 %v793_v23, %s1520_s26 }
 0x2e4   : > { %799 = vrot.lane.b32.xlu0 %v794_v31, %s1520_s26 }
 0x2e6   : > { %865 = vperm.xlu1 %1490, %v796_v32  }
 0x338   : > { %v856_v34 = vpop.permute.xlu1 %855 }
 0x33a   : > { %v858_v35 = vpop.permute.xlu0 %857 }
 0x33b   : > { %v859_v36 = vsel %vm508_vm0, %v856_v34, %v858_v35  ;;  %v860_v37 = vsel %vm508_vm0, %v858_v35, %v856_v34 }
 0x33c   : > { %v861_v38 = vmul.f32 %v1655_v17, %v859_v36  ;;  %v862_v8 = vmul.f32 %v1660_v18, %v860_v37  ;;  %v848_v39 = vpop.permute.xlu1 %847 }
 0x33e   : > { %v850_v40 = vpop.permute.xlu0 %849  ;;  %885 = vmatprep.subr.mxu0 %v862_v8 }
 0x33f   : > { %v851_v9 = vsel %vm491_vm3, %v848_v39, %v850_v40  ;;  %v852_v41 = vsel %vm491_vm3, %v850_v40, %v848_v39  ;;  %886 = vmatpush1.msra.mxu0 %v861_v38 }
 0x340   : > { %v853_v43 = vmul.f32 %v851_v9, %v1677_v28  ;;  %v854_v44 = vmul.f32 %v852_v41, %v1680_v29  ;;  %v840_v45 = vpop.permute.xlu1 %839 }
 0x342   : > { %v842_v46 = vpop.permute.xlu0 %841  ;;  %887 = vmatprep.subr.mxu0 %v854_v44 }
 0x343   : > { %v843_v47 = vsel %vm474_vm4, %v840_v45, %v842_v46  ;;  %v844_v48 = vsel %vm474_vm4, %v842_v46, %v840_v45  ;;  %888 = vmatpush1.msra.mxu0 %v853_v43  ;;  %v1956_v43 = vld [vmem:[%s2224_s6] sm:$0xff] }
 0x344   : > { %v845_v49 = vmul.f32 %v843_v47, %v1688_v33  ;;  %v846_v50 = vmul.f32 %v844_v48, %v1704_v42  ;;  %v832_v51 = vpop.permute.xlu1 %831 }
 0x346   : > { %v834_v52 = vpop.permute.xlu0 %833  ;;  %889 = vmatprep.subr.mxu0 %v846_v50 }
 0x347   : > { %v835_v53 = vsel %vm457_vm2, %v832_v51, %v834_v52  ;;  %v836_v54 = vsel %vm457_vm2, %v834_v52, %v832_v51  ;;  %890 = vmatpush1.msra.mxu0 %v845_v49 }
 0x348   : > { %v837_v55 = vmul.f32 %v835_v53, %v1683_v30  ;;  %v838_v57 = vmul.f32 %v836_v54, %v1671_v25  ;;  %v822_v59 = vpop.permute.xlu1 %821 }
 0x34a   : > { %v824_v62 = vpop.permute.xlu0 %823  ;;  %891 = vmatprep.subr.mxu0 %v838_v57 }
 0x34b   : > { %v825_v0 = vsel %vm427_vm5, %v822_v59, %v824_v62  ;;  %v826_v1 = vsel %vm427_vm5, %v824_v62, %v822_v59  ;;  %892 = vmatpush1.msra.mxu0 %v837_v55 }
 0x34c   : > { %v827_v4 = vmul.f32 %v826_v1, %v1718_v60  ;;  %v828_v5 = vmul.f32 %v825_v0, %v1721_v61  ;;  %893 = vmatprep.subr.mxu0 %v830_v63  ;;  %v814_v7 = vpop.permute.xlu1 %813 }
 0x34d   : > { %894 = vmatpush1.msra.mxu0 %v829_v3 }
 0x34e   : > { %v816_v15 = vpop.permute.xlu0 %815  ;;  %895 = vmatprep.subr.mxu0 %v828_v5 }
 0x34f   : > { %v817_v6 = vsel %vm410_vm7, %v814_v7, %v816_v15  ;;  %v818_v22 = vsel %vm410_vm7, %v816_v15, %v814_v7  ;;  %896 = vmatpush1.msra.mxu0 %v827_v4 }
 0x350   : > { %v819_v24 = vmul.f32 %v818_v22, %v1743_v20  ;;  %v820_v23 = vmul.f32 %v817_v6, %v1746_v21  ;;  %v806_v31 = vpop.permute.xlu1 %805 }
 0x352   : > { %v808_v32 = vpop.permute.xlu0 %807  ;;  %897 = vmatprep.subr.mxu0 %v820_v23 }
 0x353   : > { %v809_v34 = vsel %vm393_vm6, %v806_v31, %v808_v32  ;;  %v810_v35 = vsel %vm393_vm6, %v808_v32, %v806_v31  ;;  %898 = vmatpush1.msra.mxu0 %v819_v24 }
 0x354   : > { %v811_v36 = vmul.f32 %v810_v35, %v1736_v16  ;;  %v812_v37 = vmul.f32 %v809_v34, %v1739_v19  ;;  %v798_v38 = vpop.permute.xlu1 %797 }
 0x356   : > { %v800_v8 = vpop.permute.xlu0 %799  ;;  %899 = vmatprep.subr.mxu0 %v812_v37 }
 0x357   : > { %v801_v39 = vsel %vm376_vm8, %v798_v38, %v800_v8  ;;  %v802_v40 = vsel %vm376_vm8, %v800_v8, %v798_v38  ;;  %900 = vmatpush1.msra.mxu0 %v811_v36 }
 0x358   : > { %v803_v9 = vmul.f32 %v802_v40, %v1754_v26  ;;  %v804_v41 = vmul.f32 %v801_v39, %v1757_v27 }
 0x35a   : > { %901 = vmatprep.subr.mxu0 %v804_v41 }
 0x35b   : > { %902 = vmatpush1.msra.mxu0 %v803_v9 }
 0x35c   : > { %1461 = vmatmul.mubr.msk.f32.vlgmr.msra.gmra.mxu0 %vm718_vm10, %v1956_v43 }
 0x35d   : > { %1215 = vmatprep.mubr.f32.mxu0 %v1517_v2 }
 0x361   : > { %v1961_v44 = vpop.permute.xlu1 %865 }
 0x41c   : > { %v937_v45 = vpop.f32.mrf.mxu0 }
 0x41d   : > { %v938_v46 = vadd.f32 %v937_v45, %v1961_v44 }
 0x41e   : > { %v939_v47 = vpop.f32.mrf.mxu0 }
 0x41f   : > { %v942_v48 = vmax.f32 %v938_v46, 0.0  ;;  %v940_v49 = vadd.f32 %v939_v47, %v1961_v44 }
 0x421   : > { %v1966_v50 = vadd.f32 %v942_v48, %v1781_v56  ;;  %v943_v51 = vmax.f32 %v940_v49, 0.0 }
 0x423   : > { %v1969_v52 = vadd.f32 %v943_v51, %v1787_v58  ;;  %1004 = vrot.lane.b32.xlu0 %v1966_v50, %s1511_s19  ;;  %v978_v40 = vmul.f32 %v1966_v50, %v1644_v13 }
 0x425   : > { %1006 = vrot.lane.b32.xlu1 %v1969_v52, %s1511_s19  ;;  %v979_v38 = vmul.f32 %v1969_v52, %v1647_v14 }
 0x427   : > { %996 = vrot.lane.b32.xlu0 %v1966_v50, %s1512_s20 }
 0x429   : > { %998 = vrot.lane.b32.xlu1 %v1969_v52, %s1512_s20 }
 0x42b   : > { %988 = vrot.lane.b32.xlu0 %v1966_v50, %s1514_s22 }
 0x42d   : > { %990 = vrot.lane.b32.xlu1 %v1969_v52, %s1514_s22 }
 0x42f   : > { %980 = vrot.lane.b32.xlu0 %v1966_v50, %s1513_s21 }
 0x431   : > { %982 = vrot.lane.b32.xlu1 %v1969_v52, %s1513_s21 }
 0x433   : > { %970 = vrot.lane.b32.xlu0 %v1966_v50, %s1515_s23 }
 0x435   : > { %972 = vrot.lane.b32.xlu1 %v1969_v52, %s1515_s23 }
 0x437   : > { %962 = vrot.lane.b32.xlu0 %v1966_v50, %s1519_s25 }
 0x439   : > { %964 = vrot.lane.b32.xlu1 %v1969_v52, %s1519_s25 }
 0x43b   : > { %954 = vrot.lane.b32.xlu0 %v1966_v50, %s1516_s24 }
 0x43d   : > { %956 = vrot.lane.b32.xlu1 %v1969_v52, %s1516_s24 }
 0x43f   : > { %946 = vrot.lane.b32.xlu0 %v1966_v50, %s1520_s26 }
 0x441   : > { %948 = vrot.lane.b32.xlu1 %v1969_v52, %s1520_s26 }
 0x495   : > { %v1005_v56 = vpop.permute.xlu0 %1004 }
 0x497   : > { %v1007_v58 = vpop.permute.xlu1 %1006 }
 0x498   : > { %v1008_v53 = vsel %vm508_vm0, %v1005_v56, %v1007_v58  ;;  %v1009_v54 = vsel %vm508_vm0, %v1007_v58, %v1005_v56 }
 0x499   : > { %v1010_v55 = vmul.f32 %v1655_v17, %v1008_v53  ;;  %v1011_v57 = vmul.f32 %v1660_v18, %v1009_v54  ;;  %v997_v59 = vpop.permute.xlu0 %996 }
 0x49b   : > { %v999_v62 = vpop.permute.xlu1 %998  ;;  %1026 = vmatprep.subr.mxu1 %v1011_v57 }
 0x49c   : > { %v1000_v63 = vsel %vm491_vm3, %v997_v59, %v999_v62  ;;  %v1001_v0 = vsel %vm491_vm3, %v999_v62, %v997_v59  ;;  %1027 = vmatpush1.msra.mxu1 %v1010_v55 }
 0x49d   : > { %v1002_v1 = vmul.f32 %v1000_v63, %v1677_v28  ;;  %v1003_v3 = vmul.f32 %v1001_v0, %v1680_v29  ;;  %v989_v4 = vpop.permute.xlu0 %988 }
 0x49f   : > { %v991_v5 = vpop.permute.xlu1 %990  ;;  %1028 = vmatprep.subr.mxu1 %v1003_v3 }
 0x4a0   : > { %v992_v7 = vsel %vm474_vm4, %v989_v4, %v991_v5  ;;  %v993_v15 = vsel %vm474_vm4, %v991_v5, %v989_v4  ;;  %1029 = vmatpush1.msra.mxu1 %v1002_v1 }
 0x4a1   : > { %v994_v6 = vmul.f32 %v992_v7, %v1688_v33  ;;  %v995_v22 = vmul.f32 %v993_v15, %v1704_v42  ;;  %v981_v24 = vpop.permute.xlu0 %980 }
 0x4a3   : > { %v983_v23 = vpop.permute.xlu1 %982  ;;  %1030 = vmatprep.subr.mxu1 %v995_v22 }
 0x4a4   : > { %v984_v31 = vsel %vm457_vm2, %v981_v24, %v983_v23  ;;  %v985_v32 = vsel %vm457_vm2, %v983_v23, %v981_v24  ;;  %1031 = vmatpush1.msra.mxu1 %v994_v6 }
 0x4a5   : > { %v986_v34 = vmul.f32 %v984_v31, %v1683_v30  ;;  %v987_v35 = vmul.f32 %v985_v32, %v1671_v25  ;;  %v971_v36 = vpop.permute.xlu0 %970 }
 0x4a7   : > { %v973_v37 = vpop.permute.xlu1 %972  ;;  %1032 = vmatprep.subr.mxu1 %v987_v35 }
 0x4a8   : > { %v974_v8 = vsel %vm427_vm5, %v971_v36, %v973_v37  ;;  %v975_v39 = vsel %vm427_vm5, %v973_v37, %v971_v36  ;;  %1033 = vmatpush1.msra.mxu1 %v986_v34 }
 0x4a9   : > { %v976_v9 = vmul.f32 %v975_v39, %v1718_v60  ;;  %v977_v41 = vmul.f32 %v974_v8, %v1721_v61  ;;  %1034 = vmatprep.subr.mxu1 %v979_v38  ;;  %v963_v45 = vpop.permute.xlu0 %962 }
 0x4aa   : > { %1035 = vmatpush1.msra.mxu1 %v978_v40 }
 0x4ab   : > { %v965_v46 = vpop.permute.xlu1 %964  ;;  %1036 = vmatprep.subr.mxu1 %v977_v41 }
 0x4ac   : > { %v966_v47 = vsel %vm410_vm7, %v963_v45, %v965_v46  ;;  %v967_v48 = vsel %vm410_vm7, %v965_v46, %v963_v45  ;;  %1037 = vmatpush1.msra.mxu1 %v976_v9 }
 0x4ad   : > { %v968_v49 = vmul.f32 %v967_v48, %v1743_v20  ;;  %v969_v51 = vmul.f32 %v966_v47, %v1746_v21  ;;  %v955_v56 = vpop.permute.xlu0 %954 }
 0x4af   : > { %v957_v58 = vpop.permute.xlu1 %956  ;;  %1038 = vmatprep.subr.mxu1 %v969_v51 }
 0x4b0   : > { %v958_v53 = vsel %vm393_vm6, %v955_v56, %v957_v58  ;;  %v959_v54 = vsel %vm393_vm6, %v957_v58, %v955_v56  ;;  %1039 = vmatpush1.msra.mxu1 %v968_v49 }
 0x4b1   : > { %v960_v55 = vmul.f32 %v959_v54, %v1736_v16  ;;  %v961_v57 = vmul.f32 %v958_v53, %v1739_v19  ;;  %v947_v59 = vpop.permute.xlu0 %946 }
 0x4b3   : > { %v949_v62 = vpop.permute.xlu1 %948  ;;  %1040 = vmatprep.subr.mxu1 %v961_v57 }
 0x4b4   : > { %v950_v63 = vsel %vm376_vm8, %v947_v59, %v949_v62  ;;  %v951_v0 = vsel %vm376_vm8, %v949_v62, %v947_v59  ;;  %1041 = vmatpush1.msra.mxu1 %v960_v55 }
 0x4b5   : > { %v952_v1 = vmul.f32 %v951_v0, %v1754_v26  ;;  %v953_v3 = vmul.f32 %v950_v63, %v1757_v27 }
 0x4b7   : > { %1042 = vmatprep.subr.mxu1 %v953_v3 }
 0x4b8   : > { %1043 = vmatpush1.msra.mxu1 %v952_v1 }
 0x4b9   : > { %1462 = vmatmul.mubr.msk.f32.vlgmr.msra.gmra.mxu1 %vm718_vm10, %v1875_v11 }
 0x4ba   : > { %1366 = vmatprep.mubr.f32.mxu1 %v1517_v2 }
 0x579   : > { %v1078_v4 = vpop.f32.mrf.mxu1 }
 0x57a   : > { %v1079_v5 = vadd.f32 %v1078_v4, %v1880_v12 }
 0x57b   : > { %v1080_v7 = vpop.f32.mrf.mxu1 }
 0x57c   : > { %v1083_v15 = vmax.f32 %v1079_v5, 0.0  ;;  %v1081_v6 = vadd.f32 %v1080_v7, %v1880_v12 }
 0x57e   : > { %v1084_v22 = vmax.f32 %v1081_v6, 0.0  ;;  %1143 = vrot.lane.b32.xlu0 %v1083_v15, %s1511_s19  ;;  %v1117_v55 = vmul.f32 %v1083_v15, %v1644_v13 }
 0x580   : > { %1145 = vrot.lane.b32.xlu1 %v1084_v22, %s1511_s19  ;;  %v1118_v58 = vmul.f32 %v1084_v22, %v1647_v14 }
 0x582   : > { %1135 = vrot.lane.b32.xlu0 %v1083_v15, %s1512_s20 }
 0x584   : > { %1137 = vrot.lane.b32.xlu1 %v1084_v22, %s1512_s20 }
 0x586   : > { %1127 = vrot.lane.b32.xlu0 %v1083_v15, %s1514_s22 }
 0x588   : > { %1129 = vrot.lane.b32.xlu1 %v1084_v22, %s1514_s22 }
 0x58a   : > { %1119 = vrot.lane.b32.xlu0 %v1083_v15, %s1513_s21 }
 0x58c   : > { %1121 = vrot.lane.b32.xlu1 %v1084_v22, %s1513_s21 }
 0x58e   : > { %1109 = vrot.lane.b32.xlu0 %v1083_v15, %s1515_s23 }
 0x590   : > { %1111 = vrot.lane.b32.xlu1 %v1084_v22, %s1515_s23 }
 0x592   : > { %1101 = vrot.lane.b32.xlu0 %v1083_v15, %s1519_s25 }
 0x594   : > { %1103 = vrot.lane.b32.xlu1 %v1084_v22, %s1519_s25 }
 0x596   : > { %1093 = vrot.lane.b32.xlu0 %v1083_v15, %s1516_s24 }
 0x598   : > { %1095 = vrot.lane.b32.xlu1 %v1084_v22, %s1516_s24 }
 0x59a   : > { %1085 = vrot.lane.b32.xlu0 %v1083_v15, %s1520_s26 }
 0x59c   : > { %1087 = vrot.lane.b32.xlu1 %v1084_v22, %s1520_s26 }
 0x5f0   : > { %v1144_v2 = vpop.permute.xlu0 %1143 }
 0x5f2   : > { %v1146_v11 = vpop.permute.xlu1 %1145 }
 0x5f3   : > { %v1147_v12 = vsel %vm508_vm0, %v1144_v2, %v1146_v11  ;;  %v1148_v24 = vsel %vm508_vm0, %v1146_v11, %v1144_v2 }
 0x5f4   : > { %v1149_v23 = vmul.f32 %v1655_v17, %v1147_v12  ;;  %v1150_v31 = vmul.f32 %v1660_v18, %v1148_v24  ;;  %v1136_v32 = vpop.permute.xlu0 %1135 }
 0x5f6   : > { %v1138_v34 = vpop.permute.xlu1 %1137  ;;  %1165 = vmatprep.subr.mxu0 %v1150_v31 }
 0x5f7   : > { %v1139_v35 = vsel %vm491_vm3, %v1136_v32, %v1138_v34  ;;  %v1140_v36 = vsel %vm491_vm3, %v1138_v34, %v1136_v32  ;;  %1166 = vmatpush1.msra.mxu0 %v1149_v23 }
 0x5f8   : > { %v1141_v37 = vmul.f32 %v1139_v35, %v1677_v28  ;;  %v1142_v38 = vmul.f32 %v1140_v36, %v1680_v29  ;;  %v1128_v8 = vpop.permute.xlu0 %1127 }
 0x5fa   : > { %v1130_v39 = vpop.permute.xlu1 %1129  ;;  %1167 = vmatprep.subr.mxu0 %v1142_v38 }
 0x5fb   : > { %v1131_v17 = vsel %vm474_vm4, %v1128_v8, %v1130_v39  ;;  %v1132_v18 = vsel %vm474_vm4, %v1130_v39, %v1128_v8  ;;  %1168 = vmatpush1.msra.mxu0 %v1141_v37 }
 0x5fc   : > { %v1133_v40 = vmul.f32 %v1131_v17, %v1688_v33  ;;  %v1134_v9 = vmul.f32 %v1132_v18, %v1704_v42  ;;  %v1120_v41 = vpop.permute.xlu0 %1119 }
 0x5fe   : > { %v1122_v45 = vpop.permute.xlu1 %1121  ;;  %1169 = vmatprep.subr.mxu0 %v1134_v9 }
 0x5ff   : > { %v1123_v46 = vsel %vm457_vm2, %v1120_v41, %v1122_v45  ;;  %v1124_v47 = vsel %vm457_vm2, %v1122_v45, %v1120_v41  ;;  %1170 = vmatpush1.msra.mxu0 %v1133_v40  ;;  %v1500_v40 = vld [vmem:[%s2219_s1 + $0x10] ss:$0 sm:$0xff]  ;;  %v1501_v41 = vld [vmem:[%s2219_s1 + $0x18] ss:$0 sm:$0xff] }
 0x600   : > { %v1125_v48 = vmul.f32 %v1123_v46, %v1683_v30  ;;  %v1126_v49 = vmul.f32 %v1124_v47, %v1671_v25  ;;  %v1110_v51 = vpop.permute.xlu0 %1109 }
 0x602   : > { %v1112_v56 = vpop.permute.xlu1 %1111  ;;  %1171 = vmatprep.subr.mxu0 %v1126_v49 }
 0x603   : > { %v1113_v53 = vsel %vm427_vm5, %v1110_v51, %v1112_v56  ;;  %v1114_v54 = vsel %vm427_vm5, %v1112_v56, %v1110_v51  ;;  %1172 = vmatpush1.msra.mxu0 %v1125_v48 }
 0x604   : > { %v1115_v57 = vmul.f32 %v1114_v54, %v1718_v60  ;;  %v1116_v59 = vmul.f32 %v1113_v53, %v1721_v61  ;;  %1173 = vmatprep.subr.mxu0 %v1118_v58  ;;  %v1102_v62 = vpop.permute.xlu0 %1101 }
 0x605   : > { %1174 = vmatpush1.msra.mxu0 %v1117_v55 }
 0x606   : > { %v1104_v63 = vpop.permute.xlu1 %1103  ;;  %1175 = vmatprep.subr.mxu0 %v1116_v59 }
 0x607   : > { %v1105_v0 = vsel %vm410_vm7, %v1102_v62, %v1104_v63  ;;  %v1106_v1 = vsel %vm410_vm7, %v1104_v63, %v1102_v62  ;;  %1176 = vmatpush1.msra.mxu0 %v1115_v57 }
 0x608   : > { %v1107_v3 = vmul.f32 %v1106_v1, %v1743_v20  ;;  %v1108_v4 = vmul.f32 %v1105_v0, %v1746_v21  ;;  %v1094_v5 = vpop.permute.xlu0 %1093 }
 0x60a   : > { %v1096_v7 = vpop.permute.xlu1 %1095  ;;  %1177 = vmatprep.subr.mxu0 %v1108_v4 }
 0x60b   : > { %v1097_v15 = vsel %vm393_vm6, %v1094_v5, %v1096_v7  ;;  %v1098_v6 = vsel %vm393_vm6, %v1096_v7, %v1094_v5  ;;  %1178 = vmatpush1.msra.mxu0 %v1107_v3 }
 0x60c   : > { %v1099_v22 = vmul.f32 %v1098_v6, %v1736_v16  ;;  %v1100_v2 = vmul.f32 %v1097_v15, %v1739_v19  ;;  %v1086_v11 = vpop.permute.xlu0 %1085 }
 0x60e   : > { %v1088_v12 = vpop.permute.xlu1 %1087  ;;  %1179 = vmatprep.subr.mxu0 %v1100_v2 }
 0x60f   : > { %v1089_v24 = vsel %vm376_vm8, %v1086_v11, %v1088_v12  ;;  %v1090_v23 = vsel %vm376_vm8, %v1088_v12, %v1086_v11  ;;  %1180 = vmatpush1.msra.mxu0 %v1099_v22 }
 0x610   : > { %v1091_v31 = vmul.f32 %v1090_v23, %v1754_v26  ;;  %v1092_v32 = vmul.f32 %v1089_v24, %v1757_v27 }
 0x612   : > { %1181 = vmatprep.subr.mxu0 %v1092_v32 }
 0x613   : > { %1182 = vmatpush1.msra.mxu0 %v1091_v31 }
 0x614   : > { %1463 = vmatmul.mubr.msk.f32.vlgmr.msra.gmra.mxu0 %vm718_vm10, %v1956_v43  ;;  %v1227_v43 = vld [vmem:[%s2227_s9] sm:$0xf] }
 0x6d4   : > { %v1217_v34 = vpop.f32.mrf.mxu0 }
 0x6d5   : > { %v1218_v35 = vadd.f32 %v1217_v34, %v1961_v44 }
 0x6d6   : > { %v1219_v36 = vpop.f32.mrf.mxu0 }
 0x6d7   : > { %v1222_v37 = vmax.f32 %v1218_v35, 0.0  ;;  %v1220_v38 = vadd.f32 %v1219_v36, %v1961_v44 }
 0x6d9   : > { %v1224_v8 = vadd.f32 %v1222_v37, %v1966_v50  ;;  %v1223_v39 = vmax.f32 %v1220_v38, 0.0 }
 0x6db   : > { %v1225_v17 = vadd.f32 %v1223_v39, %v1969_v52  ;;  %1286 = vrot.lane.b32.xlu0 %v1224_v8, %s1511_s19  ;;  %v1260_v7 = vmul.f32 %v1224_v8, %v1644_v13 }
 0x6dd   : > { %1288 = vrot.lane.b32.xlu1 %v1225_v17, %s1511_s19 }
 0x6df   : > { %1278 = vrot.lane.b32.xlu0 %v1224_v8, %s1512_s20 }
 0x6e1   : > { %1280 = vrot.lane.b32.xlu1 %v1225_v17, %s1512_s20 }
 0x6e3   : > { %1270 = vrot.lane.b32.xlu0 %v1224_v8, %s1514_s22 }
 0x6e5   : > { %1272 = vrot.lane.b32.xlu1 %v1225_v17, %s1514_s22 }
 0x6e7   : > { %1262 = vrot.lane.b32.xlu0 %v1224_v8, %s1513_s21 }
 0x6e9   : > { %1264 = vrot.lane.b32.xlu1 %v1225_v17, %s1513_s21 }
 0x6eb   : > { %1252 = vrot.lane.b32.xlu0 %v1224_v8, %s1515_s23 }
 0x6ed   : > { %1254 = vrot.lane.b32.xlu1 %v1225_v17, %s1515_s23 }
 0x6ef   : > { %1244 = vrot.lane.b32.xlu0 %v1224_v8, %s1519_s25 }
 0x6f1   : > { %1246 = vrot.lane.b32.xlu1 %v1225_v17, %s1519_s25 }
 0x6f3   : > { %1236 = vrot.lane.b32.xlu0 %v1224_v8, %s1516_s24 }
 0x6f5   : > { %1238 = vrot.lane.b32.xlu1 %v1225_v17, %s1516_s24 }
 0x6f7   : > { %1228 = vrot.lane.b32.xlu0 %v1224_v8, %s1520_s26 }
 0x6f9   : > { %1230 = vrot.lane.b32.xlu1 %v1225_v17, %s1520_s26 }
 0x6fb   : > { %1296 = vperm.xlu0 %1489, %v1227_v43  }
 0x74d   : > { %v1287_v44 = vpop.permute.xlu0 %1286 }
 0x74f   : > { %v1289_v50 = vpop.permute.xlu1 %1288 }
 0x750   : > { %v1290_v52 = vsel %vm508_vm0, %v1287_v44, %v1289_v50  ;;  %v1291_v18 = vsel %vm508_vm0, %v1289_v50, %v1287_v44 }
 0x751   : > { %v1292_v9 = vmul.f32 %v1500_v40, %v1290_v52  ;;  %v1293_v45 = vmul.f32 %v1501_v41, %v1291_v18  ;;  %v1279_v46 = vpop.permute.xlu0 %1278  ;;  %v1502_v18 = vld [vmem:[%s1592_s18] sm:$0xff] }
 0x753   : > { %v1281_v47 = vpop.permute.xlu1 %1280  ;;  %1316 = vmatprep.subr.mxu1 %v1293_v45 }
 0x754   : > { %v1282_v48 = vsel %vm491_vm3, %v1279_v46, %v1281_v47  ;;  %v1283_v49 = vsel %vm491_vm3, %v1281_v47, %v1279_v46  ;;  %1317 = vmatpush1.msra.mxu1 %v1292_v9 }
 0x755   : > { %v1284_v51 = vmul.f32 %v1282_v48, %v1677_v28  ;;  %v1285_v56 = vmul.f32 %v1283_v49, %v1680_v29  ;;  %v1271_v58 = vpop.permute.xlu0 %1270 }
 0x757   : > { %v1273_v53 = vpop.permute.xlu1 %1272  ;;  %1318 = vmatprep.subr.mxu1 %v1285_v56 }
 0x758   : > { %v1274_v54 = vsel %vm474_vm4, %v1271_v58, %v1273_v53  ;;  %v1275_v55 = vsel %vm474_vm4, %v1273_v53, %v1271_v58  ;;  %1319 = vmatpush1.msra.mxu1 %v1284_v51 }
 0x759   : > { %v1276_v57 = vmul.f32 %v1274_v54, %v1688_v33  ;;  %v1277_v59 = vmul.f32 %v1275_v55, %v1704_v42  ;;  %v1263_v62 = vpop.permute.xlu0 %1262  ;;  %v1261_v33 = vmul.f32 %v1225_v17, %v1647_v14 }
 0x75b   : > { %v1265_v63 = vpop.permute.xlu1 %1264  ;;  %1320 = vmatprep.subr.mxu1 %v1277_v59 }
 0x75c   : > { %v1266_v28 = vsel %vm457_vm2, %v1263_v62, %v1265_v63  ;;  %v1267_v29 = vsel %vm457_vm2, %v1265_v63, %v1263_v62  ;;  %1321 = vmatpush1.msra.mxu1 %v1276_v57 }
 0x75d   : > { %v1268_v0 = vmul.f32 %v1266_v28, %v1683_v30  ;;  %v1269_v1 = vmul.f32 %v1267_v29, %v1671_v25  ;;  %v1253_v3 = vpop.permute.xlu0 %1252 }
 0x75f   : > { %v1255_v4 = vpop.permute.xlu1 %1254  ;;  %1322 = vmatprep.subr.mxu1 %v1269_v1 }
 0x760   : > { %v1256_v42 = vsel %vm427_vm5, %v1253_v3, %v1255_v4  ;;  %v1257_v5 = vsel %vm427_vm5, %v1255_v4, %v1253_v3  ;;  %1323 = vmatpush1.msra.mxu1 %v1268_v0 }
 0x761   : > { %v1258_v15 = vmul.f32 %v1257_v5, %v1718_v60  ;;  %v1259_v30 = vmul.f32 %v1256_v42, %v1721_v61  ;;  %1324 = vmatprep.subr.mxu1 %v1261_v33  ;;  %v1245_v25 = vpop.permute.xlu0 %1244 }
 0x762   : > { %1325 = vmatpush1.msra.mxu1 %v1260_v7 }
 0x763   : > { %v1247_v6 = vpop.permute.xlu1 %1246  ;;  %1326 = vmatprep.subr.mxu1 %v1259_v30 }
 0x764   : > { %v1248_v14 = vsel %vm410_vm7, %v1245_v25, %v1247_v6  ;;  %v1249_v22 = vsel %vm410_vm7, %v1247_v6, %v1245_v25  ;;  %1327 = vmatpush1.msra.mxu1 %v1258_v15 }
 0x765   : > { %v1250_v2 = vmul.f32 %v1249_v22, %v1743_v20  ;;  %v1251_v13 = vmul.f32 %v1248_v14, %v1746_v21  ;;  %v1237_v11 = vpop.permute.xlu0 %1236 }
 0x767   : > { %v1239_v60 = vpop.permute.xlu1 %1238  ;;  %1328 = vmatprep.subr.mxu1 %v1251_v13 }
 0x768   : > { %v1240_v61 = vsel %vm393_vm6, %v1237_v11, %v1239_v60  ;;  %v1241_v12 = vsel %vm393_vm6, %v1239_v60, %v1237_v11  ;;  %1329 = vmatpush1.msra.mxu1 %v1250_v2 }
 0x769   : > { %v1242_v24 = vmul.f32 %v1241_v12, %v1736_v16  ;;  %v1243_v23 = vmul.f32 %v1240_v61, %v1739_v19  ;;  %v1229_v31 = vpop.permute.xlu0 %1228  ;;  %v1226_v16 = vld [vmem:[%s2226_s8] sm:$0xf] }
 0x76b   : > { %v1231_v32 = vpop.permute.xlu1 %1230  ;;  %1330 = vmatprep.subr.mxu1 %v1243_v23 }
 0x76c   : > { %v1232_v20 = vsel %vm376_vm8, %v1229_v31, %v1231_v32  ;;  %v1233_v21 = vsel %vm376_vm8, %v1231_v32, %v1229_v31  ;;  %1331 = vmatpush1.msra.mxu1 %v1242_v24 }
 0x76d   : > { %v1234_v34 = vmul.f32 %v1233_v21, %v1754_v26  ;;  %v1235_v35 = vmul.f32 %v1232_v20, %v1757_v27 }
 0x76f   : > { %1332 = vmatprep.subr.mxu1 %v1235_v35 }
 0x770   : > { %1333 = vmatpush1.msra.mxu1 %v1234_v34 }
 0x771   : > { %1464 = vmatmul.mubr.msk.f32.vlgmr.msra.gmra.mxu1 %vm718_vm10, %v1226_v16 }
 0x776   : > { %v1297_v19 = vpop.permute.xlu0 %1296 }
 0x831   : > { %v1368_v36 = vpop.f32.mrf.mxu1 }
 0x832   : > { %v1369_v37 = vadd.f32 %v1368_v36, %v1297_v19 }
 0x833   : > { %v1370_v38 = vpop.f32.mrf.mxu1 }
 0x834   : > { %v1465_v10 = vmul.f32 -1.442695, %v1369_v37  ;;  %v1371_v8 = vadd.f32 %v1370_v38, %v1297_v19 }
 0x836   : > { %1492 = vpow2.f32 %v1465_v10  ;;  %v1466_v26 = vmul.f32 -1.442695, %v1371_v8 }
 0x838   : > { %1494 = vpow2.f32 %v1466_v26 }
 0x843   : > { %v1493_v27 = vpop.eup %1492 }
 0x844   : > { %v1379_v39 = vadd.f32 1.0, %v1493_v27 }
 0x845   : > { %v1495_v17 = vpop.eup %1494 }
 0x846   : > { %v1380_v43 = vadd.f32 1.0, %v1495_v17  ;;  %1496 = vrcp.f32 %v1379_v39 }
 0x848   : > { %1498 = vrcp.f32 %v1380_v43 }
 0x853   : > { %v1497_v44 = vpop.eup %1496 }
 0x855   : > { %v1499_v50 = vpop.eup %1498 }
 0x856   : > { %v1387_v52 = vcombine.low %v1497_v44, %v1499_v50 }
 0x858   : > { %v1389_v40 = vsub.f32 %v1502_v18, %v1387_v52 }
 0x85a   : > { %1390 = vst [vmem:[%s359_s16] sm:$0xff] %v1389_v40 }
 0x85b PF: > { %s20_s13 = sadd.s32 1, %s1509_s13  }
 0x85c   : > { %p17_p4 = scmp.ge.s32.totalorder %s20_s13, 4  }
 0x85e   :  { %19 = sbr.rel (!%p17_p4) target bundleno = 1 (0x1), region = 90 }

</bundles_post_ra>
